<compile_context>
chip_gen: v7x
topology: tpu7x:2x2x1
jax: 0.10.0
libtpu: 0.0.40
codegen_flags: <defaults>
</compile_context>

<pallas_src>
import math

import jax
import jax.numpy as jnp
from jax.experimental import pallas as pl
from jax.experimental.pallas import tpu as pltpu

DTYPE = jnp.bfloat16

# ----------------------------- config (small, synthetic) -----------------------------
B = 2                 # batch
T = 8                 # pred_horizon
DA = 16               # action_dim == state_token_dim
H = 32                # hidden_size
DL = 24               # lang_token_dim
LL = 8                # max_lang_cond_len
DI = 24               # img_token_dim
LI = 10               # img_cond_len
P = 24                # vision (cls_token) dim for REPA
NUM_TRAIN_TIMESTEPS = 1000
REPA_WEIGHT = 0.2
PREDICTION_TYPE = "sample"   # RDT-1B config -> diffusion target = action_gt
# TODO(synk): if the scheduler config is "epsilon", the MSE target must be the noise
# rows instead of the action_gt rows (swap `target` below to the NOISE section).

LANES = 128           # lane width of every slab / activation
KPAD = 128            # zero-padded K (and N) of every weight block

# --- flattened row layout (all section offsets are bf16-tile (16 row) aligned) ---
ST_PAD = 16                       # state-token rows per slab section (B real + pad)
XROWS = ST_PAD + B * T            # 32: [state_0..state_{B-1}; pad; action rows]
LANG_ROWS = B * LL                # 16
IMG_PAD = 16                      # img rows per sample (LI real + pad)
IMG_ROWS = B * IMG_PAD            # 32
CLS_ROWS = B * T                  # 16 (cls pre-expanded to one row per action row)

OFF_X = 0
OFF_NOISE = OFF_X + XROWS         # 32
OFF_MASK = OFF_NOISE + XROWS      # 64
OFF_LANG = OFF_MASK + XROWS       # 96
OFF_IMG = OFF_LANG + LANG_ROWS    # 112
OFF_CLS = OFF_IMG + IMG_ROWS      # 144
TOK_ROWS = OFF_CLS + CLS_ROWS     # 160

N_WMATS = 9                       # la_w1, la_w2, ia_w1, ia_w2, sa_w1_val, sa_w1_msk,
                                  # sa_w2, sa_w3, out_w(head|repa)
W_BIAS_OFF = N_WMATS * KPAD       # 1152
WSLAB_ROWS = W_BIAS_OFF + 16      # 1168

A_SAC = 0                         # f32 aux column layout (8-row aligned)
A_S1M = A_SAC + XROWS             # 32
A_LW = A_S1M + XROWS              # 64
A_IW = A_LW + LANG_ROWS           # 80
AUX_ROWS = A_IW + IMG_ROWS        # 112

assert B <= ST_PAD and LI <= IMG_PAD and B * T <= LANES
assert ST_PAD % 16 == 0 and XROWS % 16 == 0 and LANG_ROWS % 16 == 0 and IMG_ROWS % 16 == 0


def _gelu_tanh(x):
    c = math.sqrt(2.0 / math.pi)
    return 0.5 * x * (1.0 + jnp.tanh(c * (x + 0.044715 * x * x * x)))


# ----------------------------- fused Pallas kernel -----------------------------

def fused_rdt_kernel(wslab_ref, tok_ref, aux_ref, losses_ref):
    f32 = jnp.float32

    def wblk(i):                       # (128,128) bf16, K/N zero padded
        return wslab_ref[i * KPAD:(i + 1) * KPAD, :]

    biases = wslab_ref[W_BIAS_OFF:W_BIAS_OFF + 16, :].astype(f32)   # (16,128)

    def bias(i):
        return biases[i:i + 1, :]      # (1,128) f32, zero beyond the true width

    def linear(h, wi, bi):             # bf16 MXU dot, f32 accumulation + f32 bias
        return jnp.dot(h.astype(DTYPE), wblk(wi), preferred_element_type=f32) + bias(bi)

    # ---- DDPM add_noise over flattened [state; pad; action] rows (sac=1,s1m=0 on state) ----
    sac = aux_ref[A_SAC:A_SAC + XROWS, 0:1]                         # (32,1) f32
    s1m = aux_ref[A_S1M:A_S1M + XROWS, 0:1]
    x = tok_ref[OFF_X:OFF_X + XROWS, :].astype(f32)                 # values in lanes 0:DA
    nz = tok_ref[OFF_NOISE:OFF_NOISE + XROWS, :].astype(f32)
    noisy = sac * x + s1m * nz                                      # (32,128) f32

    # ---- condition adaptors: one batched matmul chain per adaptor ----
    lang = tok_ref[OFF_LANG:OFF_LANG + LANG_ROWS, :]                # (16,128) bf16
    lang_c = linear(_gelu_tanh(linear(lang, 0, 0)), 1, 1)           # (16,128) f32

    img = tok_ref[OFF_IMG:OFF_IMG + IMG_ROWS, :]                    # (32,128) bf16
    img_c = linear(_gelu_tanh(linear(img, 2, 2)), 3, 3)             # (32,128) f32

    # state adaptor layer 1:  cat([x, mask], -1) @ W1 == x @ W1[:DA] + mask @ W1[DA:]
    mask_rows = tok_ref[OFF_MASK:OFF_MASK + XROWS, :]               # (32,128) bf16
    h0 = (jnp.dot(noisy.astype(DTYPE), wblk(4), preferred_element_type=f32)
          + jnp.dot(mask_rows, wblk(5), preferred_element_type=f32)
          + bias(4))
    h1 = linear(_gelu_tanh(h0), 6, 5)
    tok = linear(_gelu_tanh(h1), 7, 6)        # (32,128): rows 0:B state toks, 16:32 action toks

    # ---- RDT model stand-in: pooled conditioning + fused output projection ----
    # (pooling loop contains NO matmuls; only tile-aligned slices, XLU sums, VPU selects)
    lw = aux_ref[A_LW:A_LW + LANG_ROWS, 0:1]                        # lang mask / token count
    iw = aux_ref[A_IW:A_IW + IMG_ROWS, 0:1]                         # 1/LI on valid img rows
    lang_w = lang_c * lw
    img_w = img_c * iw
    act_tok = tok[ST_PAD:ST_PAD + B * T, :]                         # (16,128)

    def cond_for(b):                                                # (1,128) per-sample cond
        return (tok[b:b + 1, :]
                + jnp.sum(lang_w[b * LL:(b + 1) * LL, :], axis=0, keepdims=True)
                + jnp.sum(img_w[b * IMG_PAD:(b + 1) * IMG_PAD, :], axis=0, keepdims=True))

    row = jax.lax.broadcasted_iota(jnp.int32, (B * T, LANES), 0)
    cond_rows = jnp.broadcast_to(cond_for(0), (B * T, LANES))
    for b in range(1, B):
        cond_rows = jnp.where(row >= b * T, cond_for(b), cond_rows)
    h_act = act_tok + cond_rows                                     # (16,128)

    # fused head (lanes 0:DA) + REPA projector (lanes DA:DA+P)
    out = linear(h_act, 8, 7)                                       # (16,128) f32

    lane = jax.lax.broadcasted_iota(jnp.int32, (B * T, LANES), 1)

    # ---- diffusion MSE (prediction_type == "sample" -> target = action_gt rows) ----
    target = x[ST_PAD:ST_PAD + B * T, :]                            # action_gt in lanes 0:DA
    d = jnp.where(lane < DA, out - target, 0.0)
    diffusion_loss = jnp.sum(d * d) * (1.0 / float(B * T * DA))

    # ---- REPA cosine-similarity loss (cls pre-placed at lanes DA:DA+P) ----
    cvec = tok_ref[OFF_CLS:OFF_CLS + CLS_ROWS, :].astype(f32)       # (16,128)
    proj = jnp.where((lane >= DA) & (lane < DA + P), out, 0.0)
    pc = jnp.sum(proj * cvec, axis=1, keepdims=True)                # (16,1)
    pn = jnp.sqrt(jnp.sum(proj * proj, axis=1, keepdims=True))
    cn = jnp.sqrt(jnp.sum(cvec * cvec, axis=1, keepdims=True))
    cos = pc * pl.reciprocal(jnp.maximum(pn * cn, 1e-8), approx=True)  # torch clamp semantics
    repa_loss = 1.0 - jnp.sum(cos) * (1.0 / float(B * T))

    # single lane-dense (1,128) store: lane 0 = diffusion MSE, lane 1 = REPA loss
    out_lane = jax.lax.broadcasted_iota(jnp.int32, losses_ref.shape, 1)
    losses_ref[...] = jnp.where(out_lane == 0, diffusion_loss,
                                jnp.where(out_lane == 1, repa_loss, 0.0))


# ----------------------------- Pallas wrapper -----------------------------

def rdt_fused_losses(wslab, tok_slab, aux):
    vmem = pltpu.MemorySpace.VMEM
    return pl.pallas_call(
        fused_rdt_kernel,
        out_shape=jax.ShapeDtypeStruct((1, LANES), jnp.float32),
        in_specs=[pl.BlockSpec(memory_space=vmem)] * 3,
        out_specs=pl.BlockSpec(memory_space=vmem),
    )(wslab, tok_slab, aux)


# ----------------------------- slab packing (wrapper-side layout plumbing) -----------------------------

def pack_weight_slab(params):
    """All weights/biases -> one (WSLAB_ROWS, 128) bf16 slab (1 DMA)."""
    la = params["lang_adaptor"]
    ia = params["img_adaptor"]
    sa_w1, sa_b1, sa_w2, sa_b2, sa_w3, sa_b3 = params["state_adaptor"]
    out_w = jnp.concatenate([params["head_w"], params["repa_w"]], axis=1)   # (H, DA+P)
    out_b = jnp.concatenate([params["head_b"], params["repa_b"]], axis=1)   # (1, DA+P)

    mats = [la[0], la[2], ia[0], ia[2],
            sa_w1[:DA, :], sa_w1[DA:, :],       # value / mask halves (cat order [x, mask])
            sa_w2, sa_w3, out_w]
    biases = [la[1], la[3], ia[1], ia[3], sa_b1, sa_b2, sa_b3, out_b]

    blocks = []
    for w in mats:
        blk = jnp.zeros((KPAD, LANES), DTYPE)
        blocks.append(blk.at[:w.shape[0], :w.shape[1]].set(w.astype(DTYPE)))
    bblk = jnp.zeros((16, LANES), DTYPE)
    for i, b in enumerate(biases):
        bblk = bblk.at[i, :b.shape[1]].set(b[0].astype(DTYPE))
    return jnp.concatenate(blocks + [bblk], axis=0)                          # (1168, 128)


def pack_token_slab(state_tokens, action_gt, noise, action_mask,
                    lang_tokens, img_tokens, cls_token):
    """All activation tensors -> one (TOK_ROWS, 128) bf16 slab (1 DMA)."""
    def padded(a, rows):
        return jnp.pad(a, ((0, rows - a.shape[0]), (0, LANES - a.shape[1]))).astype(DTYPE)

    x_rows = jnp.concatenate([
        padded(state_tokens.reshape(B, DA), ST_PAD),
        padded(action_gt.reshape(B * T, DA), B * T)], axis=0)
    noise_rows = jnp.concatenate([
        jnp.zeros((ST_PAD, LANES), DTYPE),
        padded(noise.reshape(B * T, DA), B * T)], axis=0)
    mask_rows = jnp.concatenate([
        padded(action_mask.reshape(B, DA), ST_PAD),
        padded(jnp.broadcast_to(action_mask, (B, T, DA)).reshape(B * T, DA), B * T)], axis=0)
    lang_rows = padded(lang_tokens.reshape(B * LL, DL), LANG_ROWS)
    img_p = jnp.pad(img_tokens, ((0, 0), (0, IMG_PAD - LI), (0, 0)))
    img_rows = padded(img_p.reshape(B * IMG_PAD, DI), IMG_ROWS)
    cls_flat = jnp.broadcast_to(cls_token, (B, T, P)).reshape(B * T, P)      # one row / action row
    cls_rows = jnp.pad(cls_flat, ((0, 0), (DA, LANES - DA - P))).astype(DTYPE)
    return jnp.concatenate([x_rows, noise_rows, mask_rows, lang_rows, img_rows, cls_rows],
                           axis=0)                                           # (160, 128)


def pack_aux(sqrt_ac, sqrt_1mac, lang_attn_mask):
    """Per-row f32 columns: DDPM scales, lang mask/count weights, img 1/LI weights (1 DMA)."""
    f32 = jnp.float32
    sac_col = jnp.concatenate([jnp.ones((ST_PAD,), f32), jnp.repeat(sqrt_ac, T)])
    s1m_col = jnp.concatenate([jnp.zeros((ST_PAD,), f32), jnp.repeat(sqrt_1mac, T)])
    lm = lang_attn_mask.astype(f32).reshape(B, LL)
    count = jnp.maximum(jnp.sum(lm, axis=1, keepdims=True), 1.0)
    lang_w = (lm / count).reshape(B * LL)
    img_w1 = jnp.concatenate([jnp.full((LI,), 1.0 / LI, f32), jnp.zeros((IMG_PAD - LI,), f32)])
    img_w = jnp.tile(img_w1, (B,))
    col = jnp.concatenate([sac_col, s1m_col, lang_w, img_w])                 # (112,)
    aux = jnp.zeros((AUX_ROWS, 8), f32)
    return aux.at[:, 0].set(col)


# ----------------------------- noise scheduler (glue) -----------------------------

def squaredcos_cap_v2_alphas_cumprod(num_steps, max_beta=0.999):
    def alpha_bar(t):
        return math.cos((t + 0.008) / 1.008 * math.pi / 2) ** 2
    betas = [min(1.0 - alpha_bar((i + 1) / num_steps) / alpha_bar(i / num_steps), max_beta)
             for i in range(num_steps)]
    betas = jnp.asarray(betas, dtype=jnp.float32)
    return jnp.cumprod(1.0 - betas)


# ----------------------------- parameter init -----------------------------

def init_params(key):
    ks = iter(jax.random.split(key, 32))

    def lin(kin, kout):
        w = (jax.random.normal(next(ks), (kin, kout), jnp.float32) * 0.02).astype(DTYPE)
        b = (jax.random.normal(next(ks), (1, kout), jnp.float32) * 0.01).astype(DTYPE)
        return w, b

    params = {}
    w1, b1 = lin(DL, H); w2, b2 = lin(H, H)
    params["lang_adaptor"] = [w1, b1, w2, b2]               # mlp2x_gelu
    w1, b1 = lin(DI, H); w2, b2 = lin(H, H)
    params["img_adaptor"] = [w1, b1, w2, b2]                # mlp2x_gelu
    w1, b1 = lin(2 * DA, H); w2, b2 = lin(H, H); w3, b3 = lin(H, H)
    params["state_adaptor"] = [w1, b1, w2, b2, w3, b3]      # mlp3x_gelu
    params["head_w"], params["head_b"] = lin(H, DA)         # stand-in for RDT final projection
    # TODO(synk): real action_to_vision_projector architecture lives inside RDT; linear used.
    params["repa_w"], params["repa_b"] = lin(H, P)
    return params


# ----------------------------- RDTRunner.forward -----------------------------

def rdt_runner_forward(wslab, alphas_cumprod, lang_tokens, lang_attn_mask,
                       img_tokens, state_tokens, action_gt, action_mask,
                       ctrl_freqs, cls_token, key):
    # cast to model dtype (matches .to(self.dtype)); ctrl_freqs unused by the stand-in head
    lang_tokens = lang_tokens.astype(DTYPE)
    img_tokens = img_tokens.astype(DTYPE)
    state_tokens = state_tokens.astype(DTYPE)
    action_gt = action_gt.astype(DTYPE)
    action_mask = action_mask.astype(DTYPE)
    cls_token = cls_token.astype(DTYPE)

    bsz = action_gt.shape[0]
    k_noise, k_t = jax.random.split(key)
    noise = jax.random.normal(k_noise, action_gt.shape, jnp.float32).astype(DTYPE)
    timesteps = jax.random.randint(k_t, (bsz,), 0, NUM_TRAIN_TIMESTEPS)

    # per-sample DDPM scale factors stay f32 end-to-end
    # TODO(synk): diffusers add_noise runs at the sample dtype (bf16); kernel keeps f32 scales.
    sqrt_ac = jnp.sqrt(alphas_cumprod[timesteps]).astype(jnp.float32)
    sqrt_1mac = jnp.sqrt(1.0 - alphas_cumprod[timesteps]).astype(jnp.float32)

    tok_slab = pack_token_slab(state_tokens, action_gt, noise, action_mask,
                               lang_tokens, img_tokens, cls_token)
    aux = pack_aux(sqrt_ac, sqrt_1mac, lang_attn_mask)

    # one fused Pallas kernel: add_noise + adaptors + head + MSE + REPA
    losses = rdt_fused_losses(wslab, tok_slab, aux)
    diffusion_loss = losses[0, 0]
    repa_loss = losses[0, 1]
    total_loss = diffusion_loss + REPA_WEIGHT * repa_loss
    return total_loss, diffusion_loss, repa_loss


# ----------------------------- main -----------------------------

if __name__ == "__main__":
    root = jax.random.PRNGKey(0)
    kp, kl, ki, ks, ka, kc, kfwd = jax.random.split(root, 7)

    params = init_params(kp)
    wslab = pack_weight_slab(params)        # packed once, outside the per-step forward
    alphas_cumprod = squaredcos_cap_v2_alphas_cumprod(NUM_TRAIN_TIMESTEPS)

    lang_tokens = jax.random.normal(kl, (B, LL, DL), jnp.float32)
    lang_attn_mask = jnp.ones((B, LL), jnp.float32)
    img_tokens = jax.random.normal(ki, (B, LI, DI), jnp.float32)
    state_tokens = jax.random.normal(ks, (B, 1, DA), jnp.float32)
    action_gt = jax.random.normal(ka, (B, T, DA), jnp.float32)
    action_mask = jnp.ones((B, 1, DA), jnp.float32)
    ctrl_freqs = jnp.full((B,), 25.0, jnp.float32)   # TODO(synk): unused by stand-in head
    cls_token = jax.random.normal(kc, (B, 1, P), jnp.float32)

    fwd = jax.jit(rdt_runner_forward)
    total, diff, repa = fwd(wslab, alphas_cumprod, lang_tokens, lang_attn_mask,
                            img_tokens, state_tokens, action_gt, action_mask,
                            ctrl_freqs, cls_token, kfwd)

    jax.block_until_ready((total, diff, repa))
    assert bool(jnp.isfinite(total)) and bool(jnp.isfinite(diff)) and bool(jnp.isfinite(repa))
    print("KERNEL_OK")
</pallas_src>

<mosaic_0001>
module attributes {stable_mosaic.version = 11 : i64} {
  func.func @fused_rdt_kernel(%arg0: memref<1168x128xbf16, #tpu.memory_space<vmem>>, %arg1: memref<160x128xbf16, #tpu.memory_space<vmem>>, %arg2: memref<112x8xf32, #tpu.memory_space<vmem>>, %arg3: memref<1x128xf32, #tpu.memory_space<vmem>>) attributes {dimension_semantics = [], scalar_prefetch = 0 : i64, scratch_operands = 0 : i64, tpu.core_type = #tpu.core_type<tc>} {
    %c1152 = arith.constant 1152 : index
    %c0 = arith.constant 0 : index
    %0 = vector.load %arg0[%c1152, %c0] : memref<1168x128xbf16, #tpu.memory_space<vmem>>, vector<16x128xbf16>
    %1 = arith.extf %0 : vector<16x128xbf16> to vector<16x128xf32>
    %c0_0 = arith.constant 0 : index
    %c0_1 = arith.constant 0 : index
    %2 = vector.load %arg2[%c0_0, %c0_1] : memref<112x8xf32, #tpu.memory_space<vmem>>, vector<32x1xf32>
    %c32 = arith.constant 32 : index
    %c0_2 = arith.constant 0 : index
    %3 = vector.load %arg2[%c32, %c0_2] : memref<112x8xf32, #tpu.memory_space<vmem>>, vector<32x1xf32>
    %c0_3 = arith.constant 0 : index
    %c0_4 = arith.constant 0 : index
    %4 = vector.load %arg1[%c0_3, %c0_4] : memref<160x128xbf16, #tpu.memory_space<vmem>>, vector<32x128xbf16>
    %5 = arith.extf %4 : vector<32x128xbf16> to vector<32x128xf32>
    %c32_5 = arith.constant 32 : index
    %c0_6 = arith.constant 0 : index
    %6 = vector.load %arg1[%c32_5, %c0_6] : memref<160x128xbf16, #tpu.memory_space<vmem>>, vector<32x128xbf16>
    %7 = arith.extf %6 : vector<32x128xbf16> to vector<32x128xf32>
    %8 = vector.broadcast %2 : vector<32x1xf32> to vector<32x128xf32>
    %9 = arith.mulf %8, %5 : vector<32x128xf32>
    %10 = vector.broadcast %3 : vector<32x1xf32> to vector<32x128xf32>
    %11 = arith.mulf %10, %7 : vector<32x128xf32>
    %12 = arith.addf %9, %11 : vector<32x128xf32>
    %c96 = arith.constant 96 : index
    %c0_7 = arith.constant 0 : index
    %13 = vector.load %arg1[%c96, %c0_7] : memref<160x128xbf16, #tpu.memory_space<vmem>>, vector<16x128xbf16>
    %c0_8 = arith.constant 0 : index
    %c0_9 = arith.constant 0 : index
    %14 = vector.load %arg0[%c0_8, %c0_9] : memref<1168x128xbf16, #tpu.memory_space<vmem>>, vector<128x128xbf16>
    %cst = arith.constant dense<0.000000e+00> : vector<16x128xf32>
    %15 = tpu.matmul %13, %14, %cst {dimension_numbers = #tpu.dot_dimension_numbers<[1], [0], [0], [1], [0, 0, 1, 1], [], []>} : vector<16x128xbf16>, vector<128x128xbf16>, vector<16x128xf32> -> vector<16x128xf32>
    %16 = vector.extract_strided_slice %1 {offsets = [0, 0], sizes = [1, 128], strides = [1, 1]} : vector<16x128xf32> to vector<1x128xf32>
    %17 = vector.broadcast %16 : vector<1x128xf32> to vector<16x128xf32>
    %18 = arith.addf %15, %17 : vector<16x128xf32>
    %cst_10 = arith.constant 5.000000e-01 : f32
    %19 = vector.broadcast %cst_10 : f32 to vector<16x128xf32>
    %20 = arith.mulf %19, %18 : vector<16x128xf32>
    %cst_11 = arith.constant 4.471500e-02 : f32
    %21 = vector.broadcast %cst_11 : f32 to vector<16x128xf32>
    %22 = arith.mulf %21, %18 : vector<16x128xf32>
    %23 = arith.mulf %22, %18 : vector<16x128xf32>
    %24 = arith.mulf %23, %18 : vector<16x128xf32>
    %25 = arith.addf %18, %24 : vector<16x128xf32>
    %cst_12 = arith.constant 0.797884583 : f32
    %26 = vector.broadcast %cst_12 : f32 to vector<16x128xf32>
    %27 = arith.mulf %26, %25 : vector<16x128xf32>
    %28 = math.tanh %27 : vector<16x128xf32>
    %cst_13 = arith.constant 1.000000e+00 : f32
    %29 = vector.broadcast %cst_13 : f32 to vector<16x128xf32>
    %30 = arith.addf %29, %28 : vector<16x128xf32>
    %31 = arith.mulf %20, %30 : vector<16x128xf32>
    %32 = arith.truncf %31 : vector<16x128xf32> to vector<16x128xbf16>
    %c128 = arith.constant 128 : index
    %c0_14 = arith.constant 0 : index
    %33 = vector.load %arg0[%c128, %c0_14] : memref<1168x128xbf16, #tpu.memory_space<vmem>>, vector<128x128xbf16>
    %cst_15 = arith.constant dense<0.000000e+00> : vector<16x128xf32>
    %34 = tpu.matmul %32, %33, %cst_15 {dimension_numbers = #tpu.dot_dimension_numbers<[1], [0], [0], [1], [0, 0, 1, 1], [], []>} : vector<16x128xbf16>, vector<128x128xbf16>, vector<16x128xf32> -> vector<16x128xf32>
    %35 = vector.extract_strided_slice %1 {offsets = [1, 0], sizes = [1, 128], strides = [1, 1]} : vector<16x128xf32> to vector<1x128xf32>
    %36 = vector.broadcast %35 : vector<1x128xf32> to vector<16x128xf32>
    %37 = arith.addf %34, %36 : vector<16x128xf32>
    %c112 = arith.constant 112 : index
    %c0_16 = arith.constant 0 : index
    %38 = vector.load %arg1[%c112, %c0_16] : memref<160x128xbf16, #tpu.memory_space<vmem>>, vector<32x128xbf16>
    %c256 = arith.constant 256 : index
    %c0_17 = arith.constant 0 : index
    %39 = vector.load %arg0[%c256, %c0_17] : memref<1168x128xbf16, #tpu.memory_space<vmem>>, vector<128x128xbf16>
    %cst_18 = arith.constant dense<0.000000e+00> : vector<32x128xf32>
    %40 = tpu.matmul %38, %39, %cst_18 {dimension_numbers = #tpu.dot_dimension_numbers<[1], [0], [0], [1], [0, 0, 1, 1], [], []>} : vector<32x128xbf16>, vector<128x128xbf16>, vector<32x128xf32> -> vector<32x128xf32>
    %41 = vector.extract_strided_slice %1 {offsets = [2, 0], sizes = [1, 128], strides = [1, 1]} : vector<16x128xf32> to vector<1x128xf32>
    %42 = vector.broadcast %41 : vector<1x128xf32> to vector<32x128xf32>
    %43 = arith.addf %40, %42 : vector<32x128xf32>
    %cst_19 = arith.constant 5.000000e-01 : f32
    %44 = vector.broadcast %cst_19 : f32 to vector<32x128xf32>
    %45 = arith.mulf %44, %43 : vector<32x128xf32>
    %cst_20 = arith.constant 4.471500e-02 : f32
    %46 = vector.broadcast %cst_20 : f32 to vector<32x128xf32>
    %47 = arith.mulf %46, %43 : vector<32x128xf32>
    %48 = arith.mulf %47, %43 : vector<32x128xf32>
    %49 = arith.mulf %48, %43 : vector<32x128xf32>
    %50 = arith.addf %43, %49 : vector<32x128xf32>
    %cst_21 = arith.constant 0.797884583 : f32
    %51 = vector.broadcast %cst_21 : f32 to vector<32x128xf32>
    %52 = arith.mulf %51, %50 : vector<32x128xf32>
    %53 = math.tanh %52 : vector<32x128xf32>
    %cst_22 = arith.constant 1.000000e+00 : f32
    %54 = vector.broadcast %cst_22 : f32 to vector<32x128xf32>
    %55 = arith.addf %54, %53 : vector<32x128xf32>
    %56 = arith.mulf %45, %55 : vector<32x128xf32>
    %57 = arith.truncf %56 : vector<32x128xf32> to vector<32x128xbf16>
    %c384 = arith.constant 384 : index
    %c0_23 = arith.constant 0 : index
    %58 = vector.load %arg0[%c384, %c0_23] : memref<1168x128xbf16, #tpu.memory_space<vmem>>, vector<128x128xbf16>
    %cst_24 = arith.constant dense<0.000000e+00> : vector<32x128xf32>
    %59 = tpu.matmul %57, %58, %cst_24 {dimension_numbers = #tpu.dot_dimension_numbers<[1], [0], [0], [1], [0, 0, 1, 1], [], []>} : vector<32x128xbf16>, vector<128x128xbf16>, vector<32x128xf32> -> vector<32x128xf32>
    %60 = vector.extract_strided_slice %1 {offsets = [3, 0], sizes = [1, 128], strides = [1, 1]} : vector<16x128xf32> to vector<1x128xf32>
    %61 = vector.broadcast %60 : vector<1x128xf32> to vector<32x128xf32>
    %62 = arith.addf %59, %61 : vector<32x128xf32>
    %c64 = arith.constant 64 : index
    %c0_25 = arith.constant 0 : index
    %63 = vector.load %arg1[%c64, %c0_25] : memref<160x128xbf16, #tpu.memory_space<vmem>>, vector<32x128xbf16>
    %64 = arith.truncf %12 : vector<32x128xf32> to vector<32x128xbf16>
    %c512 = arith.constant 512 : index
    %c0_26 = arith.constant 0 : index
    %65 = vector.load %arg0[%c512, %c0_26] : memref<1168x128xbf16, #tpu.memory_space<vmem>>, vector<128x128xbf16>
    %cst_27 = arith.constant dense<0.000000e+00> : vector<32x128xf32>
    %66 = tpu.matmul %64, %65, %cst_27 {dimension_numbers = #tpu.dot_dimension_numbers<[1], [0], [0], [1], [0, 0, 1, 1], [], []>} : vector<32x128xbf16>, vector<128x128xbf16>, vector<32x128xf32> -> vector<32x128xf32>
    %c640 = arith.constant 640 : index
    %c0_28 = arith.constant 0 : index
    %67 = vector.load %arg0[%c640, %c0_28] : memref<1168x128xbf16, #tpu.memory_space<vmem>>, vector<128x128xbf16>
    %cst_29 = arith.constant dense<0.000000e+00> : vector<32x128xf32>
    %68 = tpu.matmul %63, %67, %cst_29 {dimension_numbers = #tpu.dot_dimension_numbers<[1], [0], [0], [1], [0, 0, 1, 1], [], []>} : vector<32x128xbf16>, vector<128x128xbf16>, vector<32x128xf32> -> vector<32x128xf32>
    %69 = arith.addf %66, %68 : vector<32x128xf32>
    %70 = vector.extract_strided_slice %1 {offsets = [4, 0], sizes = [1, 128], strides = [1, 1]} : vector<16x128xf32> to vector<1x128xf32>
    %71 = vector.broadcast %70 : vector<1x128xf32> to vector<32x128xf32>
    %72 = arith.addf %69, %71 : vector<32x128xf32>
    %cst_30 = arith.constant 5.000000e-01 : f32
    %73 = vector.broadcast %cst_30 : f32 to vector<32x128xf32>
    %74 = arith.mulf %73, %72 : vector<32x128xf32>
    %cst_31 = arith.constant 4.471500e-02 : f32
    %75 = vector.broadcast %cst_31 : f32 to vector<32x128xf32>
    %76 = arith.mulf %75, %72 : vector<32x128xf32>
    %77 = arith.mulf %76, %72 : vector<32x128xf32>
    %78 = arith.mulf %77, %72 : vector<32x128xf32>
    %79 = arith.addf %72, %78 : vector<32x128xf32>
    %cst_32 = arith.constant 0.797884583 : f32
    %80 = vector.broadcast %cst_32 : f32 to vector<32x128xf32>
    %81 = arith.mulf %80, %79 : vector<32x128xf32>
    %82 = math.tanh %81 : vector<32x128xf32>
    %cst_33 = arith.constant 1.000000e+00 : f32
    %83 = vector.broadcast %cst_33 : f32 to vector<32x128xf32>
    %84 = arith.addf %83, %82 : vector<32x128xf32>
    %85 = arith.mulf %74, %84 : vector<32x128xf32>
    %86 = arith.truncf %85 : vector<32x128xf32> to vector<32x128xbf16>
    %c768 = arith.constant 768 : index
    %c0_34 = arith.constant 0 : index
    %87 = vector.load %arg0[%c768, %c0_34] : memref<1168x128xbf16, #tpu.memory_space<vmem>>, vector<128x128xbf16>
    %cst_35 = arith.constant dense<0.000000e+00> : vector<32x128xf32>
    %88 = tpu.matmul %86, %87, %cst_35 {dimension_numbers = #tpu.dot_dimension_numbers<[1], [0], [0], [1], [0, 0, 1, 1], [], []>} : vector<32x128xbf16>, vector<128x128xbf16>, vector<32x128xf32> -> vector<32x128xf32>
    %89 = vector.extract_strided_slice %1 {offsets = [5, 0], sizes = [1, 128], strides = [1, 1]} : vector<16x128xf32> to vector<1x128xf32>
    %90 = vector.broadcast %89 : vector<1x128xf32> to vector<32x128xf32>
    %91 = arith.addf %88, %90 : vector<32x128xf32>
    %cst_36 = arith.constant 5.000000e-01 : f32
    %92 = vector.broadcast %cst_36 : f32 to vector<32x128xf32>
    %93 = arith.mulf %92, %91 : vector<32x128xf32>
    %cst_37 = arith.constant 4.471500e-02 : f32
    %94 = vector.broadcast %cst_37 : f32 to vector<32x128xf32>
    %95 = arith.mulf %94, %91 : vector<32x128xf32>
    %96 = arith.mulf %95, %91 : vector<32x128xf32>
    %97 = arith.mulf %96, %91 : vector<32x128xf32>
    %98 = arith.addf %91, %97 : vector<32x128xf32>
    %cst_38 = arith.constant 0.797884583 : f32
    %99 = vector.broadcast %cst_38 : f32 to vector<32x128xf32>
    %100 = arith.mulf %99, %98 : vector<32x128xf32>
    %101 = math.tanh %100 : vector<32x128xf32>
    %cst_39 = arith.constant 1.000000e+00 : f32
    %102 = vector.broadcast %cst_39 : f32 to vector<32x128xf32>
    %103 = arith.addf %102, %101 : vector<32x128xf32>
    %104 = arith.mulf %93, %103 : vector<32x128xf32>
    %105 = arith.truncf %104 : vector<32x128xf32> to vector<32x128xbf16>
    %c896 = arith.constant 896 : index
    %c0_40 = arith.constant 0 : index
    %106 = vector.load %arg0[%c896, %c0_40] : memref<1168x128xbf16, #tpu.memory_space<vmem>>, vector<128x128xbf16>
    %cst_41 = arith.constant dense<0.000000e+00> : vector<32x128xf32>
    %107 = tpu.matmul %105, %106, %cst_41 {dimension_numbers = #tpu.dot_dimension_numbers<[1], [0], [0], [1], [0, 0, 1, 1], [], []>} : vector<32x128xbf16>, vector<128x128xbf16>, vector<32x128xf32> -> vector<32x128xf32>
    %108 = vector.extract_strided_slice %1 {offsets = [6, 0], sizes = [1, 128], strides = [1, 1]} : vector<16x128xf32> to vector<1x128xf32>
    %109 = vector.broadcast %108 : vector<1x128xf32> to vector<32x128xf32>
    %110 = arith.addf %107, %109 : vector<32x128xf32>
    %c64_42 = arith.constant 64 : index
    %c0_43 = arith.constant 0 : index
    %111 = vector.load %arg2[%c64_42, %c0_43] : memref<112x8xf32, #tpu.memory_space<vmem>>, vector<16x1xf32>
    %c80 = arith.constant 80 : index
    %c0_44 = arith.constant 0 : index
    %112 = vector.load %arg2[%c80, %c0_44] : memref<112x8xf32, #tpu.memory_space<vmem>>, vector<32x1xf32>
    %113 = vector.broadcast %111 : vector<16x1xf32> to vector<16x128xf32>
    %114 = arith.mulf %37, %113 : vector<16x128xf32>
    %115 = vector.broadcast %112 : vector<32x1xf32> to vector<32x128xf32>
    %116 = arith.mulf %62, %115 : vector<32x128xf32>
    %117 = vector.extract_strided_slice %110 {offsets = [16, 0], sizes = [16, 128], strides = [1, 1]} : vector<32x128xf32> to vector<16x128xf32>
    %118 = tpu.iota {dimensions = array<i32: 0>} : vector<16x128xi32>
    %119 = vector.extract_strided_slice %110 {offsets = [0, 0], sizes = [1, 128], strides = [1, 1]} : vector<32x128xf32> to vector<1x128xf32>
    %120 = vector.extract_strided_slice %114 {offsets = [0, 0], sizes = [8, 128], strides = [1, 1]} : vector<16x128xf32> to vector<8x128xf32>
    %cst_45 = arith.constant dense<0.000000e+00> : vector<128xf32>
    %121 = vector.multi_reduction <add>, %120, %cst_45 [0] : vector<8x128xf32> to vector<128xf32>
    %122 = vector.shape_cast %121 : vector<128xf32> to vector<1x128xf32>
    %123 = arith.addf %119, %122 : vector<1x128xf32>
    %124 = vector.extract_strided_slice %116 {offsets = [0, 0], sizes = [16, 128], strides = [1, 1]} : vector<32x128xf32> to vector<16x128xf32>
    %cst_46 = arith.constant dense<0.000000e+00> : vector<128xf32>
    %125 = vector.multi_reduction <add>, %124, %cst_46 [0] : vector<16x128xf32> to vector<128xf32>
    %126 = vector.shape_cast %125 : vector<128xf32> to vector<1x128xf32>
    %127 = arith.addf %123, %126 : vector<1x128xf32>
    %128 = vector.shape_cast %127 : vector<1x128xf32> to vector<1x128xf32>
    %129 = vector.broadcast %128 : vector<1x128xf32> to vector<16x128xf32>
    %c8_i32 = arith.constant 8 : i32
    %130 = vector.broadcast %c8_i32 : i32 to vector<16x128xi32>
    %131 = arith.cmpi sge, %118, %130 : vector<16x128xi32>
    %132 = vector.extract_strided_slice %110 {offsets = [1, 0], sizes = [1, 128], strides = [1, 1]} : vector<32x128xf32> to vector<1x128xf32>
    %133 = vector.extract_strided_slice %114 {offsets = [8, 0], sizes = [8, 128], strides = [1, 1]} : vector<16x128xf32> to vector<8x128xf32>
    %cst_47 = arith.constant dense<0.000000e+00> : vector<128xf32>
    %134 = vector.multi_reduction <add>, %133, %cst_47 [0] : vector<8x128xf32> to vector<128xf32>
    %135 = vector.shape_cast %134 : vector<128xf32> to vector<1x128xf32>
    %136 = arith.addf %132, %135 : vector<1x128xf32>
    %137 = vector.extract_strided_slice %116 {offsets = [16, 0], sizes = [16, 128], strides = [1, 1]} : vector<32x128xf32> to vector<16x128xf32>
    %cst_48 = arith.constant dense<0.000000e+00> : vector<128xf32>
    %138 = vector.multi_reduction <add>, %137, %cst_48 [0] : vector<16x128xf32> to vector<128xf32>
    %139 = vector.shape_cast %138 : vector<128xf32> to vector<1x128xf32>
    %140 = arith.addf %136, %139 : vector<1x128xf32>
    %141 = vector.shape_cast %140 : vector<1x128xf32> to vector<1x128xf32>
    %142 = vector.broadcast %141 : vector<1x128xf32> to vector<16x128xf32>
    %143 = arith.select %131, %142, %129 : vector<16x128xi1>, vector<16x128xf32>
    %144 = arith.addf %117, %143 : vector<16x128xf32>
    %145 = arith.truncf %144 : vector<16x128xf32> to vector<16x128xbf16>
    %c1024 = arith.constant 1024 : index
    %c0_49 = arith.constant 0 : index
    %146 = vector.load %arg0[%c1024, %c0_49] : memref<1168x128xbf16, #tpu.memory_space<vmem>>, vector<128x128xbf16>
    %cst_50 = arith.constant dense<0.000000e+00> : vector<16x128xf32>
    %147 = tpu.matmul %145, %146, %cst_50 {dimension_numbers = #tpu.dot_dimension_numbers<[1], [0], [0], [1], [0, 0, 1, 1], [], []>} : vector<16x128xbf16>, vector<128x128xbf16>, vector<16x128xf32> -> vector<16x128xf32>
    %148 = vector.extract_strided_slice %1 {offsets = [7, 0], sizes = [1, 128], strides = [1, 1]} : vector<16x128xf32> to vector<1x128xf32>
    %149 = vector.broadcast %148 : vector<1x128xf32> to vector<16x128xf32>
    %150 = arith.addf %147, %149 : vector<16x128xf32>
    %151 = tpu.iota {dimensions = array<i32: 1>} : vector<16x128xi32>
    %152 = vector.extract_strided_slice %5 {offsets = [16, 0], sizes = [16, 128], strides = [1, 1]} : vector<32x128xf32> to vector<16x128xf32>
    %c16_i32 = arith.constant 16 : i32
    %153 = vector.broadcast %c16_i32 : i32 to vector<16x128xi32>
    %154 = arith.cmpi slt, %151, %153 : vector<16x128xi32>
    %155 = arith.subf %150, %152 : vector<16x128xf32>
    %cst_51 = arith.constant 0.000000e+00 : f32
    %156 = vector.broadcast %cst_51 : f32 to vector<16x128xf32>
    %157 = arith.select %154, %155, %156 : vector<16x128xi1>, vector<16x128xf32>
    %158 = arith.mulf %157, %157 : vector<16x128xf32>
    %159 = vector.shape_cast %158 : vector<16x128xf32> to vector<1x16x128xf32>
    %cst_52 = arith.constant dense<0.000000e+00> : vector<1xf32>
    %160 = vector.multi_reduction <add>, %159, %cst_52 [1, 2] : vector<1x16x128xf32> to vector<1xf32>
    %161 = vector.shape_cast %160 : vector<1xf32> to vector<1x1x1xf32>
    %162 = vector.extract %161[0, 0, 0] : f32 from vector<1x1x1xf32>
    %cst_53 = arith.constant 3.906250e-03 : f32
    %163 = arith.mulf %162, %cst_53 : f32
    %c144 = arith.constant 144 : index
    %c0_54 = arith.constant 0 : index
    %164 = vector.load %arg1[%c144, %c0_54] : memref<160x128xbf16, #tpu.memory_space<vmem>>, vector<16x128xbf16>
    %165 = arith.extf %164 : vector<16x128xbf16> to vector<16x128xf32>
    %c16_i32_55 = arith.constant 16 : i32
    %166 = vector.broadcast %c16_i32_55 : i32 to vector<16x128xi32>
    %167 = arith.cmpi sge, %151, %166 : vector<16x128xi32>
    %c40_i32 = arith.constant 40 : i32
    %168 = vector.broadcast %c40_i32 : i32 to vector<16x128xi32>
    %169 = arith.cmpi slt, %151, %168 : vector<16x128xi32>
    %170 = arith.andi %167, %169 : vector<16x128xi1>
    %cst_56 = arith.constant 0.000000e+00 : f32
    %171 = vector.broadcast %cst_56 : f32 to vector<16x128xf32>
    %172 = arith.select %170, %150, %171 : vector<16x128xi1>, vector<16x128xf32>
    %173 = arith.mulf %172, %165 : vector<16x128xf32>
    %cst_57 = arith.constant dense<0.000000e+00> : vector<16xf32>
    %174 = vector.multi_reduction <add>, %173, %cst_57 [1] : vector<16x128xf32> to vector<16xf32>
    %175 = vector.shape_cast %174 : vector<16xf32> to vector<16x1xf32>
    %176 = arith.mulf %172, %172 : vector<16x128xf32>
    %cst_58 = arith.constant dense<0.000000e+00> : vector<16xf32>
    %177 = vector.multi_reduction <add>, %176, %cst_58 [1] : vector<16x128xf32> to vector<16xf32>
    %178 = vector.shape_cast %177 : vector<16xf32> to vector<16x1xf32>
    %179 = math.sqrt %178 : vector<16x1xf32>
    %180 = arith.mulf %165, %165 : vector<16x128xf32>
    %cst_59 = arith.constant dense<0.000000e+00> : vector<16xf32>
    %181 = vector.multi_reduction <add>, %180, %cst_59 [1] : vector<16x128xf32> to vector<16xf32>
    %182 = vector.shape_cast %181 : vector<16xf32> to vector<16x1xf32>
    %183 = math.sqrt %182 : vector<16x1xf32>
    %184 = arith.mulf %179, %183 : vector<16x1xf32>
    %cst_60 = arith.constant 9.99999993E-9 : f32
    %185 = vector.broadcast %cst_60 : f32 to vector<16x1xf32>
    %186 = arith.maximumf %184, %185 : vector<16x1xf32>
    %187 = tpu.reciprocal %186 {approx = true} : vector<16x1xf32> -> vector<16x1xf32>
    %188 = arith.mulf %175, %187 : vector<16x1xf32>
    %189 = vector.shape_cast %188 : vector<16x1xf32> to vector<1x16x1xf32>
    %cst_61 = arith.constant dense<0.000000e+00> : vector<1xf32>
    %190 = vector.multi_reduction <add>, %189, %cst_61 [1, 2] : vector<1x16x1xf32> to vector<1xf32>
    %191 = vector.shape_cast %190 : vector<1xf32> to vector<1x1x1xf32>
    %192 = vector.extract %191[0, 0, 0] : f32 from vector<1x1x1xf32>
    %cst_62 = arith.constant 6.250000e-02 : f32
    %193 = arith.mulf %192, %cst_62 : f32
    %cst_63 = arith.constant 1.000000e+00 : f32
    %194 = arith.subf %cst_63, %193 : f32
    %195 = tpu.iota {dimensions = array<i32: 1>} : vector<1x128xi32>
    %c0_i32 = arith.constant 0 : i32
    %196 = vector.broadcast %c0_i32 : i32 to vector<1x128xi32>
    %197 = arith.cmpi eq, %195, %196 : vector<1x128xi32>
    %c1_i32 = arith.constant 1 : i32
    %198 = vector.broadcast %c1_i32 : i32 to vector<1x128xi32>
    %199 = arith.cmpi eq, %195, %198 : vector<1x128xi32>
    %cst_64 = arith.constant 0.000000e+00 : f32
    %200 = vector.broadcast %194 : f32 to vector<1x128xf32>
    %201 = vector.broadcast %cst_64 : f32 to vector<1x128xf32>
    %202 = arith.select %199, %200, %201 : vector<1x128xi1>, vector<1x128xf32>
    %203 = vector.broadcast %163 : f32 to vector<1x128xf32>
    %204 = arith.select %197, %203, %202 : vector<1x128xi1>, vector<1x128xf32>
    %c0_65 = arith.constant 0 : index
    %c0_66 = arith.constant 0 : index
    %205 = vector.load %arg3[%c0_65, %c0_66] : memref<1x128xf32, #tpu.memory_space<vmem>>, vector<1x128xf32>
    tpu.vector_store %arg3[%c0_65, %c0_66], %204 {strides = array<i32>} : memref<1x128xf32, #tpu.memory_space<vmem>>, vector<1x128xf32>,
    return
  }
}

</mosaic_0001>

<bundles_post_ra>
// kernel: tile.6
= control target key start
LH: loop header
LB: loop body
LE: loop exit
PB: predicated region body
PF: predicated region fallthrough
CT: control target
= control target key end

     0   :  { %s22_s0 = inlined_call_operand.vmem [shape: f32[16], index: 0, kind: input, shape index: {}]   ;;  %s23_s1 = inlined_call_operand.vmem [shape: f32[2,16], index: 1, kind: output, shape index: {}]  }
   0x1   :  { %v4_v0 = vld [vmem:[%s22_s0] ss:$0 sm:$0xff] }
   0x2   :  { %5 = vst [vmem:[%s23_s1] sm:$0x3] %v4_v0 }

// kernel: rdt_runner_forward.21
= control target key start
LH: loop header
LB: loop body
LE: loop exit
PB: predicated region body
PF: predicated region fallthrough
CT: control target
= control target key end

     0   :  { %v1993_v0 = vmov 0   ;;  %v1994_v5 = vmov 0.0   ;;  %vm1995_vm0 = vmmov 0   ;;  %vm1469_vm13 = vcmask 7168   ;;  %s2405_s2 = inlined_call_operand.vmem [shape: f32[112,8], index: 2, kind: input, shape index: {}]   ;;  %s2406_s0 = inlined_call_operand.vmem [shape: bf16[1168,128], index: 0, kind: input, shape index: {}]   ;;  %s2407_s1 = inlined_call_operand.vmem [shape: bf16[160,128], index: 1, kind: input, shape index: {}]   ;;  %s2408_s3 = inlined_call_operand.vmem [shape: f32[1,128], index: 3, kind: output, shape index: {}]  }
   0x1   :  { %1875 = vset.pattern.permute.xlu1 %v1993_v0  ;;  %1874 = vset.pattern.permute.xlu0 %v1993_v0  ;;  %v21_v1 = vld [vmem:[%s2405_s2 + $0x20] sm:$0xff]  ;;  %v22_v4 = vld [vmem:[%s2405_s2 + $0x28] sm:$0xff]  ;;  %v20_v8 = vld [vmem:[%s2405_s2 + $0x18] sm:$0xff] }
   0x2   :  { %v17_v2 = vld [vmem:[%s2405_s2] sm:$0xff]  ;;  %67 = vperm.xlu1 %1875, %v21_v1   ;;  %1683 = vmatprep.subr.bf16.mxu0 %v1994_v5  ;;  %v18_v6 = vld [vmem:[%s2405_s2 + $0x8] sm:$0xff]  ;;  %v19_v9 = vld [vmem:[%s2405_s2 + $0x10] sm:$0xff] }
   0x3   :  { %43 = vperm.xlu0 %1874, %v17_v2   ;;  %v1876_v3 = vld [vmem:[%s2406_s0] sm:$0xff]   ;;  %1699 = vmatprep.mubr.msk.bf16.mxu0 %vm1995_vm0, %v1994_v5  ;;  %v1877_v7 = vld [vmem:[%s2406_s0 + $0x8] sm:$0xff]   ;;  %v1878_v10 = vld [vmem:[%s2406_s0 + $0x10] sm:$0xff]  }
   0x4   :  { %1684 = vmatpush3.bf16.msra.mxu0 %v1876_v3  ;;  %1703 = vmatprep.subr.bf16.mxu1 %v1994_v5  ;;  %v24_v11 = vld [vmem:[%s2405_s2 + $0x38] sm:$0xff]  ;;  %v23_v12 = vld [vmem:[%s2405_s2 + $0x30] sm:$0xff]  ;;  %v1188_v14 = vld [vmem:[%s2405_s2 + $0x48] sm:$0xff] }
   0x5   :  { %1685 = vmatprep.subr.bf16.mxu0 %v1994_v5  ;;  %1719 = vmatprep.mubr.msk.bf16.mxu1 %vm1995_vm0, %v1994_v5  ;;  %v1879_v13 = vld [vmem:[%s2406_s0 + $0x18] sm:$0xff]   ;;  %v1187_v15 = vld [vmem:[%s2405_s2 + $0x40] sm:$0xff]  ;;  %v1189_v18 = vld [vmem:[%s2405_s2 + $0x50] sm:$0xff] }
   0x6   :  { %72 = vperm.xlu1 %1875, %v22_v4   ;;  %v1880_v16 = vld [vmem:[%s2406_s0 + $0x20] sm:$0xff]   ;;  %v1190_v17 = vld [vmem:[%s2405_s2 + $0x58] sm:$0xff]  ;;  %v1881_v19 = vld [vmem:[%s2406_s0 + $0x28] sm:$0xff]  }
   0x7   :  { %48 = vperm.xlu0 %1874, %v18_v6   ;;  %v1192_v20 = vld [vmem:[%s2405_s2 + $0x68] sm:$0xff]  ;;  %v1191_v21 = vld [vmem:[%s2405_s2 + $0x60] sm:$0xff]  ;;  %v1882_v22 = vld [vmem:[%s2406_s0 + $0x30] sm:$0xff]  }
   0x8   :  { %1686 = vmatpush3.bf16.msra.mxu0 %v1877_v7  ;;  %v1883_v23 = vld [vmem:[%s2406_s0 + $0x38] sm:$0xff]   ;;  %v1885_v24 = vld [vmem:[%s2406_s0 + $0x80] sm:$0xff]   ;;  %v1884_v25 = vld [vmem:[%s2407_s1 + $0x30] sm:$0xff]  }
   0x9   :  { %1687 = vmatprep.subr.bf16.mxu0 %v1994_v5  ;;  %v1893_v26 = vld [vmem:[%s2407_s1 + $0x38] sm:$0xff]   ;;  %v1886_v27 = vld [vmem:[%s2406_s0 + $0x88] sm:$0xff]   ;;  %v1887_v28 = vld [vmem:[%s2406_s0 + $0x90] sm:$0xff]  }
   0xa   :  { %58 = vperm.xlu1 %1875, %v20_v8   ;;  %v1888_v29 = vld [vmem:[%s2406_s0 + $0x98] sm:$0xff]   ;;  %v1889_v30 = vld [vmem:[%s2406_s0 + $0xa0] sm:$0xff]   ;;  %v1890_v31 = vld [vmem:[%s2406_s0 + $0xa8] sm:$0xff]  }
   0xb   :  { %53 = vperm.xlu0 %1874, %v19_v9   ;;  %v1891_v32 = vld [vmem:[%s2406_s0 + $0xb0] sm:$0xff]   ;;  %v1892_v33 = vld [vmem:[%s2406_s0 + $0xb8] sm:$0xff]   ;;  %v1895_v34 = vld [vmem:[%s2406_s0 + $0x140] sm:$0xff]  }
   0xc   :  { %1688 = vmatpush3.bf16.msra.mxu0 %v1878_v10  ;;  %v1894_v35 = vld [vmem:[%s2407_s1 + $0x40] sm:$0xff]   ;;  %v1896_v37 = vld [vmem:[%s2406_s0 + $0x148] sm:$0xff]   ;;  %v1897_v38 = vld [vmem:[%s2406_s0 + $0x150] sm:$0xff]  }
   0xd   :  { %1689 = vmatprep.subr.bf16.mxu0 %v1994_v5  ;;  %v1903_v36 = vld [vmem:[%s2407_s1 + $0x20] sm:$0xff]   ;;  %v1898_v39 = vld [vmem:[%s2406_s0 + $0x158] sm:$0xff]   ;;  %v1900_v41 = vld [vmem:[%s2406_s0 + $0x168] sm:$0xff]  }
   0xe   :  { %82 = vperm.xlu1 %1875, %v24_v11   ;;  %v1899_v40 = vld [vmem:[%s2406_s0 + $0x160] sm:$0xff]   ;;  %v1901_v42 = vld [vmem:[%s2406_s0 + $0x170] sm:$0xff]   ;;  %v1902_v43 = vld [vmem:[%s2406_s0 + $0x178] sm:$0xff]  }
   0xf   :  { %77 = vperm.xlu0 %1874, %v23_v12   ;;  %v1904_v44 = vld [vmem:[%s2406_s0 + $0x100] sm:$0xff]   ;;  %v1905_v45 = vld [vmem:[%s2407_s1 + $0x28] sm:$0xff]   ;;  %v1907_v47 = vld [vmem:[%s2406_s0 + $0x110] sm:$0xff]  }
  0x10   :  { %1690 = vmatpush3.bf16.msra.mxu0 %v1879_v13  ;;  %v1906_v46 = vld [vmem:[%s2406_s0 + $0x108] sm:$0xff]   ;;  %v1908_v48 = vld [vmem:[%s2406_s0 + $0x118] sm:$0xff]   ;;  %v1909_v49 = vld [vmem:[%s2406_s0 + $0x120] sm:$0xff]  }
  0x11   :  { %1691 = vmatprep.subr.bf16.mxu0 %v1994_v5  ;;  %v1910_v50 = vld [vmem:[%s2406_s0 + $0x128] sm:$0xff]   ;;  %v1911_v51 = vld [vmem:[%s2406_s0 + $0x130] sm:$0xff]   ;;  %v1913_v52 = vld [vmem:[%s2406_s0 + $0x40] sm:$0xff]  }
  0x12   :  { %1200 = vperm.xlu1 %1875, %v1188_v14   ;;  %1704 = vmatpush3.bf16.msra.mxu1 %v1913_v52  ;;  %v1912_v53 = vld [vmem:[%s2406_s0 + $0x138] sm:$0xff]   ;;  %v1914_v54 = vld [vmem:[%s2406_s0 + $0x48] sm:$0xff]   ;;  %v1593_v55 = vld [vmem:[%s2407_s1 + $0x10] sm:$0xff]  }
  0x13   :  { %1195 = vperm.xlu0 %1874, %v1187_v15   ;;  %1705 = vmatprep.subr.bf16.mxu1 %v1994_v5  ;;  %v1573_v56 = vld [vmem:[%s2407_s1] sm:$0xff]   ;;  %v1915_v57 = vld [vmem:[%s2406_s0 + $0x50] sm:$0xff]   ;;  %v1916_v58 = vld [vmem:[%s2406_s0 + $0x58] sm:$0xff]   ;;  %v1582_v59 = vunpack.c.l.bf16 %v1593_v55  ;;  %v1583_v63 = vunpack.c.h.bf16 %v1593_v55 }
  0x14   :  { %1692 = vmatpush3.bf16.msra.mxu0 %v1880_v16  ;;  %v1574_v60 = vunpack.c.l.bf16 %v1573_v56  ;;  %v1575_v0 = vunpack.c.h.bf16 %v1573_v56  ;;  %v1917_v1 = vld [vmem:[%s2406_s0 + $0x60] sm:$0xff]   ;;  %v2211_v9 = vld [vmem:[%s2407_s1 + $0x8] sm:$0xff]   ;;  %v1594_v10 = vld [vmem:[%s2407_s1 + $0x18] sm:$0xff]  }
  0x15   :  { %1693 = vmatprep.subr.bf16.mxu0 %v1994_v5  ;;  %v1918_v11 = vld [vmem:[%s2406_s0 + $0x68] sm:$0xff]   ;;  %v1579_v15 = vunpack.c.h.bf16 %v2211_v9 }
  0x16   :  { %1212 = vperm.xlu1 %1875, %v1190_v17   ;;  %1706 = vmatpush3.bf16.msra.mxu1 %v1914_v54  ;;  %v1578_v17 = vunpack.c.l.bf16 %v2211_v9 }
  0x17   :  { %1207 = vperm.xlu0 %1874, %v1189_v18   ;;  %1707 = vmatprep.subr.bf16.mxu1 %v1994_v5 }
  0x18   :  { %1694 = vmatpush3.bf16.msra.mxu0 %v1881_v19  ;;  %v1587_v19 = vunpack.c.h.bf16 %v1594_v10 }
  0x19   :  { %1695 = vmatprep.subr.bf16.mxu0 %v1994_v5 }
  0x1a   :  { %1222 = vperm.xlu1 %1875, %v1192_v20   ;;  %1708 = vmatpush3.bf16.msra.mxu1 %v1915_v57  ;;  %v1586_v20 = vunpack.c.l.bf16 %v1594_v10  ;;  %v1923_v10 = vld [vmem:[%s2406_s0 + $0xd0] sm:$0xff]  }
  0x1b   :  { %1217 = vperm.xlu0 %1874, %v1191_v21   ;;  %1709 = vmatprep.subr.bf16.mxu1 %v1994_v5  ;;  %v1919_v21 = vld [vmem:[%s2406_s0 + $0x70] sm:$0xff]  }
  0x1c   :  { %1696 = vmatpush3.bf16.msra.mxu0 %v1882_v22 }
  0x1d   :  { %1697 = vmatprep.subr.bf16.mxu0 %v1994_v5 }
  0x1e   :  { %1710 = vmatpush3.bf16.msra.mxu1 %v1916_v58 }
  0x1f   :  { %1711 = vmatprep.subr.bf16.mxu1 %v1994_v5 }
  0x20   :  { %1698 = vmatpush3.bf16.msra.mxu0 %v1883_v23 }
  0x21   :  { %1723 = vmatprep.subr.bf16.mxu0 %v1885_v24 }
  0x22   :  { %1712 = vmatpush3.bf16.msra.mxu1 %v1917_v1 }
  0x23   :  { %1700 = vmatmul.mubr.bf16.vlgmr.msra.gmra.mrb[0].mxu0 %v1884_v25  ;;  %1713 = vmatprep.subr.bf16.mxu1 %v1994_v5 }
  0x24   :  { %1724 = vmatpush3.bf16.msra.mxu0 %v1885_v24  ;;  %1739 = vmatprep.mubr.bf16.mxu0 %v1893_v26 }
  0x25   :  { %1725 = vmatprep.subr.bf16.mxu0 %v1886_v27 }
  0x26   :  { %1714 = vmatpush3.bf16.msra.mxu1 %v1918_v11 }
  0x27   :  { %1715 = vmatprep.subr.bf16.mxu1 %v1994_v5 }
  0x28   :  { %1726 = vmatpush3.bf16.msra.mxu0 %v1886_v27 }
  0x29   :  { %1727 = vmatprep.subr.bf16.mxu0 %v1887_v28 }
  0x2a   :  { %1716 = vmatpush3.bf16.msra.mxu1 %v1919_v21 }
  0x2b   :  { %1717 = vmatprep.subr.bf16.mxu1 %v1994_v5 }
  0x2c   :  { %1728 = vmatpush3.bf16.msra.mxu0 %v1887_v28  ;;  %v1920_v28 = vld [vmem:[%s2406_s0 + $0x78] sm:$0xff]  }
  0x2d   :  { %1729 = vmatprep.subr.bf16.mxu0 %v1888_v29 }
  0x2e   :  { %1718 = vmatpush3.bf16.msra.mxu1 %v1920_v28 }
  0x30   :  { %1730 = vmatpush3.bf16.msra.mxu0 %v1888_v29 }
  0x31   :  { %1731 = vmatprep.subr.bf16.mxu0 %v1889_v30 }
  0x34   :  { %1732 = vmatpush3.bf16.msra.mxu0 %v1889_v30 }
  0x35   :  { %1733 = vmatprep.subr.bf16.mxu0 %v1890_v31 }
  0x38   :  { %1734 = vmatpush3.bf16.msra.mxu0 %v1890_v31 }
  0x39   :  { %1735 = vmatprep.subr.bf16.mxu0 %v1891_v32 }
  0x3c   :  { %1736 = vmatpush3.bf16.msra.mxu0 %v1891_v32  ;;  %v1921_v32 = vld [vmem:[%s2406_s0 + $0xc0] sm:$0xff]  }
  0x3d   :  { %1737 = vmatprep.subr.bf16.mxu0 %v1892_v33  ;;  %1743 = vmatprep.subr.bf16.mxu1 %v1921_v32 }
  0x40   :  { %1738 = vmatpush3.bf16.msra.mxu0 %v1892_v33  ;;  %v111_v33 = vlaneseq }
  0x41   :  { %1763 = vmatprep.subr.bf16.mxu0 %v1895_v34 }
  0x43   :  { %1740 = vmatmul.mubr.bf16.vlgmr.msra.gmra.mrb[4].mxu0 %v1894_v35  ;;  %v15_v35 = vld [vmem:[%s2406_s0 + $0x240] sm:$0xf] }
  0x44   :  { %1764 = vmatpush3.bf16.msra.mxu0 %v1895_v34  ;;  %1779 = vmatprep.mubr.bf16.mxu0 %v1903_v36  ;;  %v2240_v34 = vshrl.u32 %v111_v33, 7  ;;  %v2245_v36 = vunpack.c.l.bf16 %v15_v35 }
  0x45   :  { %1765 = vmatprep.subr.bf16.mxu0 %v1896_v37 }
  0x46   :  { %v360_v58 = vsub.s32 2, %v2240_v34 }
  0x48   :  { %1766 = vmatpush3.bf16.msra.mxu0 %v1896_v37  ;;  %v113_v37 = vsub.s32 0, %v2240_v34 }
  0x49   :  { %1767 = vmatprep.subr.bf16.mxu0 %v1897_v38 }
  0x4c   :  { %1768 = vmatpush3.bf16.msra.mxu0 %v1897_v38  ;;  %v114_v38 = vrot.slane %v2245_v36, %v113_v37 }
  0x4d   :  { %1769 = vmatprep.subr.bf16.mxu0 %v1898_v39 }
  0x50   :  { %1770 = vmatpush3.bf16.msra.mxu0 %v1898_v39 }
  0x51   :  { %1771 = vmatprep.subr.bf16.mxu0 %v1899_v40 }
  0x54   :  { %1772 = vmatpush3.bf16.msra.mxu0 %v1899_v40 }
  0x55   :  { %1773 = vmatprep.subr.bf16.mxu0 %v1900_v41 }
  0x58   :  { %1774 = vmatpush3.bf16.msra.mxu0 %v1900_v41 }
  0x59   :  { %1775 = vmatprep.subr.bf16.mxu0 %v1901_v42 }
  0x5c   :  { %1776 = vmatpush3.bf16.msra.mxu0 %v1901_v42 }
  0x5d   :  { %1777 = vmatprep.subr.bf16.mxu0 %v1902_v43 }
  0x60   :  { %1778 = vmatpush3.bf16.msra.mxu0 %v1902_v43 }
  0x61   :  { %1783 = vmatprep.subr.bf16.mxu0 %v1904_v44 }
  0x63   :  { %1780 = vmatmul.mubr.bf16.vlgmr.msra.gmra.mrb[8].mxu0 %v1905_v45 }
  0x64   :  { %1784 = vmatpush3.bf16.msra.mxu0 %v1904_v44 }
  0x65   :  { %1785 = vmatprep.subr.bf16.mxu0 %v1906_v46 }
  0x68   :  { %1786 = vmatpush3.bf16.msra.mxu0 %v1906_v46 }
  0x69   :  { %1787 = vmatprep.subr.bf16.mxu0 %v1907_v47 }
  0x6c   :  { %1788 = vmatpush3.bf16.msra.mxu0 %v1907_v47 }
  0x6d   :  { %1789 = vmatprep.subr.bf16.mxu0 %v1908_v48 }
  0x70   :  { %1790 = vmatpush3.bf16.msra.mxu0 %v1908_v48 }
  0x71   :  { %1791 = vmatprep.subr.bf16.mxu0 %v1909_v49 }
  0x74   :  { %1792 = vmatpush3.bf16.msra.mxu0 %v1909_v49 }
  0x75   :  { %1793 = vmatprep.subr.bf16.mxu0 %v1910_v50 }
  0x78   :  { %1794 = vmatpush3.bf16.msra.mxu0 %v1910_v50 }
  0x79   :  { %1795 = vmatprep.subr.bf16.mxu0 %v1911_v51 }
  0x7c   :  { %1796 = vmatpush3.bf16.msra.mxu0 %v1911_v51 }
  0x7d   :  { %1797 = vmatprep.subr.bf16.mxu0 %v1912_v53 }
  0x80   :  { %1798 = vmatpush3.bf16.msra.mxu0 %v1912_v53 }
  0x81   :  { %v68_v61 = vpop.permute.xlu1 %67  ;;  %1843 = vmatprep.subr.bf16.mxu0 %v1994_v5 }
  0x82   :  { %v44_v62 = vpop.permute.xlu0 %43  ;;  %v85_v2 = vmul.f32 %v1582_v59, %v68_v61 }
  0x83   :  { %v61_v3 = vmul.f32 %v1574_v60, %v44_v62 }
  0x85   :  { %v73_v4 = vpop.permute.xlu1 %72  ;;  %v89_v12 = vadd.f32 %v85_v2, %v61_v3  ;;  %v1922_v2 = vld [vmem:[%s2406_s0 + $0xc8] sm:$0xff]  }
  0x86   :  { %v49_v6 = vpop.permute.xlu0 %48  ;;  %v86_v7 = vmul.f32 %v1583_v63, %v73_v4 }
  0x87   :  { %v62_v8 = vmul.f32 %v1575_v0, %v49_v6  ;;  %v361_v0 = vrot.slane %v2245_v36, %v360_v58 }
  0x89   :  { %v90_v13 = vadd.f32 %v86_v7, %v62_v8  ;;  %v59_v14 = vpop.permute.xlu1 %58 }
  0x8a   :  { %v54_v16 = vpop.permute.xlu0 %53  ;;  %v64_v24 = vmul.f32 %v1579_v15, %v59_v14 }
  0x8b   :  { %v630_v18 = vpack.c.bf16 %v90_v13, %v89_v12  ;;  %v63_v25 = vmul.f32 %v1578_v17, %v54_v16 }
  0x8d   :  { %1799 = vmatprep.mubr.bf16.mxu0 %v630_v18  ;;  %v83_v22 = vpop.permute.xlu1 %82 }
  0x8e   :  { %v78_v23 = vpop.permute.xlu0 %77  ;;  %v88_v26 = vmul.f32 %v1587_v19, %v83_v22  ;;  %v1924_v22 = vld [vmem:[%s2406_s0 + $0xd8] sm:$0xff]  }
  0x8f   :  { %v87_v27 = vmul.f32 %v1586_v20, %v78_v23 }
  0x90   :  { %v92_v29 = vadd.f32 %v88_v26, %v64_v24 }
  0x91   :  { %v91_v30 = vadd.f32 %v87_v27, %v63_v25 }
  0x93   :  { %v631_v31 = vpack.c.bf16 %v92_v29, %v91_v30  ;;  %v1925_v30 = vld [vmem:[%s2406_s0 + $0xe0] sm:$0xff]  }
  0x95   :  { %1800 = vmatmul.mubr.bf16.vlgmr.msra.gmra.mrb[8].mxu0 %v631_v31 }
  0x96   :  { %1859 = vmatprep.mubr.msk.bf16.mxu0 %vm1995_vm0, %v1994_v5 }
  0xf6   :  { %v203_v39 = vpop.f32.mrb[0].mxu0 }
  0xf7   :  { %v204_v40 = vadd.f32 %v203_v39, %v114_v38  ;;  %v1701_v41 = vpop.f32.mrb[1].mxu0 }
  0xf8   :  { %v206_v42 = vpop.f32.mrb[2].mxu0  ;;  %v1926_v41 = vld [vmem:[%s2406_s0 + $0xe8] sm:$0xff]  }
  0xf9   :  { %v212_v43 = vmul.f32 0.044715, %v204_v40  ;;  %v207_v44 = vadd.f32 %v206_v42, %v114_v38  ;;  %v1702_v45 = vpop.f32.mrb[3].mxu0  ;;  %v210_v59 = vmul.f32 0.5, %v204_v40 }
  0xfb   :  { %v214_v46 = vmul.f32 %v212_v43, %v204_v40  ;;  %v213_v47 = vmul.f32 0.044715, %v207_v44  ;;  %v211_v60 = vmul.f32 0.5, %v207_v44  ;;  %v1927_v43 = vld [vmem:[%s2406_s0 + $0xf0] sm:$0xff]  }
  0xfd   :  { %v216_v48 = vmul.f32 %v214_v46, %v204_v40  ;;  %v215_v49 = vmul.f32 %v213_v47, %v207_v44 }
  0xff   :  { %v217_v50 = vmul.f32 %v215_v49, %v207_v44  ;;  %v218_v51 = vadd.f32 %v216_v48, %v204_v40 }
 0x101   :  { %v219_v52 = vadd.f32 %v217_v50, %v207_v44  ;;  %v220_v53 = vmul.f32 0.7978846, %v218_v51  ;;  %v1928_v44 = vld [vmem:[%s2406_s0 + $0xf8] sm:$0xff]  }
 0x103   :  { %v221_v54 = vmul.f32 0.7978846, %v219_v52  ;;  %1953 = vtanh.f32 %v220_v53 }
 0x105   :  { %1955 = vtanh.f32 %v221_v54  ;;  %v1929_v54 = vld [vmem:[%s2406_s0 + $0x180] sm:$0xff]  }
 0x10d   :  { %v1954_v55 = vpop.eup %1953 }
 0x10e   :  { %v224_v56 = vadd.f32 1.0, %v1954_v55 }
 0x10f   :  { %v1956_v57 = vpop.eup %1955 }
 0x110   :  { %v225_v61 = vadd.f32 1.0, %v1956_v57  ;;  %v226_v62 = vmul.f32 %v224_v56, %v210_v59 }
 0x112   :  { %v227_v63 = vmul.f32 %v225_v61, %v211_v60 }
 0x114   :  { %v228_v1 = vpack.c.bf16 %v227_v63, %v226_v62 }
 0x116   :  { %1720 = vmatmul.mubr.bf16.vlgmr.msra.gmra.mrb[0].mxu1 %v228_v1  ;;  %v1741_v3 = vpop.f32.mrb[4].mxu0  ;;  %v1931_v1 = vld [vmem:[%s2406_s0 + $0x190] sm:$0xff]  }
 0x117   :  { %v465_v4 = vadd.f32 %v1741_v3, %v361_v0  ;;  %v456_v6 = vpop.f32.mrb[5].mxu0  ;;  %1744 = vmatpush3.bf16.msra.mxu1 %v1921_v32  ;;  %v1933_v3 = vld [vmem:[%s2406_s0 + $0x1a0] sm:$0xff]  }
 0x118   :  { %v457_v7 = vadd.f32 %v456_v6, %v361_v0  ;;  %v1742_v8 = vpop.f32.mrb[6].mxu0  ;;  %1745 = vmatprep.subr.bf16.mxu1 %v1922_v2  ;;  %v1935_v6 = vld [vmem:[%s2406_s0 + $0x1b0] sm:$0xff]  }
 0x119   :  { %v477_v11 = vmul.f32 0.044715, %v465_v4  ;;  %v468_v12 = vadd.f32 %v1742_v8, %v361_v0  ;;  %v459_v13 = vpop.f32.mrb[7].mxu0  ;;  %v473_v51 = vmul.f32 0.5, %v465_v4  ;;  %v872_v8 = vsub.s32 4, %v2240_v34 }
 0x11a   :  { %v475_v14 = vmul.f32 0.044715, %v457_v7  ;;  %v460_v16 = vadd.f32 %v459_v13, %v361_v0  ;;  %v471_v55 = vmul.f32 0.5, %v457_v7  ;;  %v1930_v0 = vld [vmem:[%s2406_s0 + $0x188] sm:$0xff]  }
 0x11b   :  { %v481_v18 = vmul.f32 %v477_v11, %v465_v4  ;;  %v478_v19 = vmul.f32 0.044715, %v468_v12  ;;  %1746 = vmatpush3.bf16.msra.mxu1 %v1922_v2  ;;  %v474_v52 = vmul.f32 0.5, %v468_v12  ;;  %v1932_v2 = vld [vmem:[%s2406_s0 + $0x198] sm:$0xff]  }
 0x11c   :  { %v479_v20 = vmul.f32 %v475_v14, %v457_v7  ;;  %v476_v21 = vmul.f32 0.044715, %v460_v16  ;;  %1747 = vmatprep.subr.bf16.mxu1 %v1923_v10  ;;  %v472_v56 = vmul.f32 0.5, %v460_v16 }
 0x11d   :  { %v485_v23 = vmul.f32 %v481_v18, %v465_v4  ;;  %v482_v24 = vmul.f32 %v478_v19, %v468_v12 }
 0x11e   :  { %v483_v25 = vmul.f32 %v479_v20, %v457_v7  ;;  %v480_v26 = vmul.f32 %v476_v21, %v460_v16 }
 0x11f   :  { %v489_v27 = vadd.f32 %v485_v23, %v465_v4  ;;  %v486_v28 = vmul.f32 %v482_v24, %v468_v12  ;;  %1748 = vmatpush3.bf16.msra.mxu1 %v1923_v10  ;;  %v1934_v4 = vld [vmem:[%s2406_s0 + $0x1a8] sm:$0xff]   ;;  %v873_v10 = vrot.slane %v2245_v36, %v872_v8 }
 0x120   :  { %v484_v29 = vmul.f32 %v480_v26, %v460_v16  ;;  %1749 = vmatprep.subr.bf16.mxu1 %v1924_v22  ;;  %v487_v31 = vadd.f32 %v483_v25, %v457_v7  ;;  %v1936_v7 = vld [vmem:[%s2406_s0 + $0x1b8] sm:$0xff]  }
 0x121   :  { %v493_v32 = vmul.f32 0.7978846, %v489_v27  ;;  %v490_v35 = vadd.f32 %v486_v28, %v468_v12 }
 0x122   :  { %v488_v38 = vadd.f32 %v484_v29, %v460_v16  ;;  %v491_v39 = vmul.f32 0.7978846, %v487_v31 }
 0x123   :  { %1957 = vtanh.f32 %v493_v32  ;;  %v494_v40 = vmul.f32 0.7978846, %v490_v35  ;;  %1750 = vmatpush3.bf16.msra.mxu1 %v1924_v22 }
 0x124   :  { %1751 = vmatprep.subr.bf16.mxu1 %v1925_v30  ;;  %v492_v42 = vmul.f32 0.7978846, %v488_v38  ;;  %1959 = vtanh.f32 %v491_v39 }
 0x125   :  { %1961 = vtanh.f32 %v494_v40 }
 0x126   :  { %1963 = vtanh.f32 %v492_v42 }
 0x127   :  { %1752 = vmatpush3.bf16.msra.mxu1 %v1925_v30 }
 0x128   :  { %1753 = vmatprep.subr.bf16.mxu1 %v1926_v41 }
 0x12b   :  { %1754 = vmatpush3.bf16.msra.mxu1 %v1926_v41 }
 0x12c   :  { %1755 = vmatprep.subr.bf16.mxu1 %v1927_v43 }
 0x12d   :  { %v1958_v45 = vpop.eup %1957 }
 0x12e   :  { %v1960_v46 = vpop.eup %1959  ;;  %v501_v47 = vadd.f32 1.0, %v1958_v45 }
 0x12f   :  { %v1962_v48 = vpop.eup %1961  ;;  %1756 = vmatpush3.bf16.msra.mxu1 %v1927_v43  ;;  %v499_v49 = vadd.f32 1.0, %v1960_v46 }
 0x130   :  { %v1964_v50 = vpop.eup %1963  ;;  %1757 = vmatprep.subr.bf16.mxu1 %v1928_v44  ;;  %v502_v53 = vadd.f32 1.0, %v1962_v48  ;;  %v505_v58 = vmul.f32 %v501_v47, %v473_v51 }
 0x131   :  { %v500_v57 = vadd.f32 1.0, %v1964_v50  ;;  %v503_v60 = vmul.f32 %v499_v49, %v471_v55 }
 0x132   :  { %v506_v59 = vmul.f32 %v502_v53, %v474_v52 }
 0x133   :  { %1758 = vmatpush3.bf16.msra.mxu1 %v1928_v44  ;;  %v504_v61 = vmul.f32 %v500_v57, %v472_v56 }
 0x134   :  { %v508_v62 = vpack.c.bf16 %v506_v59, %v505_v58  ;;  %1803 = vmatprep.subr.bf16.mxu1 %v1929_v54 }
 0x135   :  { %v507_v63 = vpack.c.bf16 %v504_v61, %v503_v60 }
 0x137   :  { %1759 = vmatprep.mubr.bf16.mxu1 %v507_v63  ;;  %v1937_v63 = vld [vmem:[%s2406_s0 + $0x1c0] sm:$0xff]  }
 0x138   :  { %1760 = vmatmul.mubr.bf16.vlgmr.msra.gmra.mrb[4].mxu1 %v508_v62 }
 0x139   :  { %1804 = vmatpush3.bf16.msra.mxu1 %v1929_v54 }
 0x13a   :  { %1805 = vmatprep.subr.bf16.mxu1 %v1930_v0 }
 0x13d   :  { %1806 = vmatpush3.bf16.msra.mxu1 %v1930_v0  ;;  %v1938_v0 = vld [vmem:[%s2406_s0 + $0x1c8] sm:$0xff]  }
 0x13e   :  { %1807 = vmatprep.subr.bf16.mxu1 %v1931_v1 }
 0x141   :  { %1808 = vmatpush3.bf16.msra.mxu1 %v1931_v1  ;;  %v1939_v1 = vld [vmem:[%s2406_s0 + $0x1d0] sm:$0xff]  }
 0x142   :  { %1809 = vmatprep.subr.bf16.mxu1 %v1932_v2 }
 0x145   :  { %1810 = vmatpush3.bf16.msra.mxu1 %v1932_v2 }
 0x146   :  { %1811 = vmatprep.subr.bf16.mxu1 %v1933_v3 }
 0x149   :  { %1812 = vmatpush3.bf16.msra.mxu1 %v1933_v3  ;;  %v1940_v3 = vld [vmem:[%s2406_s0 + $0x1d8] sm:$0xff]  }
 0x14a   :  { %1813 = vmatprep.subr.bf16.mxu1 %v1934_v4 }
 0x14d   :  { %1814 = vmatpush3.bf16.msra.mxu1 %v1934_v4 }
 0x14e   :  { %1815 = vmatprep.subr.bf16.mxu1 %v1935_v6 }
 0x151   :  { %1816 = vmatpush3.bf16.msra.mxu1 %v1935_v6 }
 0x152   :  { %1817 = vmatprep.subr.bf16.mxu1 %v1936_v7 }
 0x155   :  { %1818 = vmatpush3.bf16.msra.mxu1 %v1936_v7  ;;  %v1941_v7 = vld [vmem:[%s2406_s0 + $0x1e0] sm:$0xff]  }
 0x156   :  { %1823 = vmatprep.subr.bf16.mxu1 %v1937_v63 }
 0x168   :  { %v1801_v11 = vpop.f32.mrb[8].mxu0 }
 0x169   :  { %v876_v12 = vadd.f32 %v1801_v11, %v873_v10  ;;  %v855_v13 = vpop.f32.mrb[9].mxu0  ;;  %v1943_v11 = vld [vmem:[%s2406_s0 + $0x1f0] sm:$0xff]  }
 0x16a   :  { %v874_v14 = vadd.f32 %v873_v10, %v855_v13  ;;  %v1802_v16 = vpop.f32.mrb[10].mxu0  ;;  %v1945_v13 = vld [vmem:[%s2406_s0 + $0x200] sm:$0xff]  }
 0x16b   :  { %v884_v18 = vmul.f32 0.044715, %v876_v12  ;;  %v877_v19 = vadd.f32 %v1802_v16, %v873_v10  ;;  %v858_v20 = vpop.f32.mrb[11].mxu0  ;;  %v880_v51 = vmul.f32 0.5, %v876_v12  ;;  %1844 = vmatpush3.bf16.msra.mxu0 %v1945_v13  ;;  %v2335_v16 = vpop.permute.xlu1 %1200 }
 0x16c   :  { %v882_v21 = vmul.f32 0.044715, %v874_v14  ;;  %v875_v22 = vadd.f32 %v873_v10, %v858_v20  ;;  %v878_v54 = vmul.f32 0.5, %v874_v14  ;;  %v1942_v10 = vld [vmem:[%s2406_s0 + $0x1e8] sm:$0xff]   ;;  %1845 = vmatprep.subr.bf16.mxu0 %v1994_v5  ;;  %v1947_v20 = vld [vmem:[%s2406_s0 + $0x210] sm:$0xff]  }
 0x16d   :  { %v888_v23 = vmul.f32 %v884_v18, %v876_v12  ;;  %v885_v24 = vmul.f32 0.044715, %v877_v19  ;;  %v881_v52 = vmul.f32 0.5, %v877_v19  ;;  %v2337_v18 = vpop.permute.xlu0 %1195 }
 0x16e   :  { %v886_v25 = vmul.f32 %v882_v21, %v874_v14  ;;  %v883_v26 = vmul.f32 0.044715, %v875_v22  ;;  %v879_v55 = vmul.f32 0.5, %v875_v22 }
 0x16f   :  { %v892_v27 = vmul.f32 %v888_v23, %v876_v12  ;;  %v889_v28 = vmul.f32 %v885_v24, %v877_v19  ;;  %v1213_v23 = vpop.permute.xlu1 %1212 }
 0x170   :  { %v890_v29 = vmul.f32 %v886_v25, %v874_v14  ;;  %v887_v30 = vmul.f32 %v883_v26, %v875_v22 }
 0x171   :  { %v896_v31 = vadd.f32 %v892_v27, %v876_v12  ;;  %v893_v32 = vmul.f32 %v889_v28, %v877_v19  ;;  %v1944_v12 = vld [vmem:[%s2406_s0 + $0x1f8] sm:$0xff]   ;;  %v1208_v24 = vpop.permute.xlu0 %1207  ;;  %v1949_v28 = vld [vmem:[%s2406_s0 + $0x220] sm:$0xff]  }
 0x172   :  { %v891_v35 = vmul.f32 %v887_v30, %v875_v22  ;;  %v894_v38 = vadd.f32 %v890_v29, %v874_v14  ;;  %v1946_v14 = vld [vmem:[%s2406_s0 + $0x208] sm:$0xff]  }
 0x173   :  { %v900_v39 = vmul.f32 0.7978846, %v896_v31  ;;  %v897_v40 = vadd.f32 %v893_v32, %v877_v19  ;;  %v527_v19 = vsub.s32 3, %v2240_v34  ;;  %1846 = vmatpush3.bf16.msra.mxu0 %v1946_v14 }
 0x174   :  { %v895_v41 = vadd.f32 %v891_v35, %v875_v22  ;;  %v898_v42 = vmul.f32 0.7978846, %v894_v38  ;;  %1847 = vmatprep.subr.bf16.mxu0 %v1994_v5  ;;  %v1948_v22 = vld [vmem:[%s2406_s0 + $0x218] sm:$0xff]   ;;  %v1223_v35 = vpop.permute.xlu1 %1222 }
 0x175   :  { %1965 = vtanh.f32 %v900_v39  ;;  %v901_v43 = vmul.f32 0.7978846, %v897_v40  ;;  %v528_v21 = vrot.slane %v2245_v36, %v527_v19  ;;  %v1218_v38 = vpop.permute.xlu0 %1217 }
 0x176   :  { %v899_v44 = vmul.f32 0.7978846, %v895_v41  ;;  %1967 = vtanh.f32 %v898_v42 }
 0x177   :  { %1969 = vtanh.f32 %v901_v43  ;;  %1848 = vmatpush3.bf16.msra.mxu0 %v1947_v20 }
 0x178   :  { %1971 = vtanh.f32 %v899_v44  ;;  %1849 = vmatprep.subr.bf16.mxu0 %v1994_v5 }
 0x17b   :  { %1850 = vmatpush3.bf16.msra.mxu0 %v1948_v22 }
 0x17c   :  { %1851 = vmatprep.subr.bf16.mxu0 %v1994_v5 }
 0x17f   :  { %v1966_v45 = vpop.eup %1965  ;;  %1852 = vmatpush3.bf16.msra.mxu0 %v1949_v28 }
 0x180   :  { %v1968_v46 = vpop.eup %1967  ;;  %v908_v47 = vadd.f32 1.0, %v1966_v45  ;;  %1853 = vmatprep.subr.bf16.mxu0 %v1994_v5 }
 0x181   :  { %v1970_v48 = vpop.eup %1969  ;;  %v906_v49 = vadd.f32 1.0, %v1968_v46  ;;  %v934_v46 = vsub.s32 5, %v2240_v34 }
 0x182   :  { %v1972_v50 = vpop.eup %1971  ;;  %v909_v53 = vadd.f32 1.0, %v1970_v48  ;;  %v912_v57 = vmul.f32 %v908_v47, %v880_v51 }
 0x183   :  { %v907_v56 = vadd.f32 1.0, %v1972_v50  ;;  %v910_v59 = vmul.f32 %v906_v49, %v878_v54  ;;  %v935_v47 = vrot.slane %v2245_v36, %v934_v46  ;;  %v1952_v46 = vld [vmem:[%s2406_s0 + $0x238] sm:$0xff]  }
 0x184   :  { %v913_v58 = vmul.f32 %v909_v53, %v881_v52 }
 0x185   :  { %v911_v60 = vmul.f32 %v907_v56, %v879_v55 }
 0x186   :  { %v915_v61 = vpack.c.bf16 %v913_v58, %v912_v57 }
 0x187   :  { %v914_v62 = vpack.c.bf16 %v911_v60, %v910_v59 }
 0x189   :  { %1819 = vmatprep.mubr.bf16.mxu1 %v914_v62 }
 0x18a   :  { %1820 = vmatmul.mubr.bf16.vlgmr.msra.gmra.mrb[8].mxu1 %v915_v61 }
 0x18b   :  { %1824 = vmatpush3.bf16.msra.mxu1 %v1937_v63 }
 0x18c   :  { %1825 = vmatprep.subr.bf16.mxu1 %v1938_v0 }
 0x18f   :  { %1826 = vmatpush3.bf16.msra.mxu1 %v1938_v0 }
 0x190   :  { %1827 = vmatprep.subr.bf16.mxu1 %v1939_v1 }
 0x193   :  { %1828 = vmatpush3.bf16.msra.mxu1 %v1939_v1 }
 0x194   :  { %1829 = vmatprep.subr.bf16.mxu1 %v1940_v3 }
 0x197   :  { %1830 = vmatpush3.bf16.msra.mxu1 %v1940_v3 }
 0x198   :  { %1831 = vmatprep.subr.bf16.mxu1 %v1941_v7 }
 0x19b   :  { %1832 = vmatpush3.bf16.msra.mxu1 %v1941_v7 }
 0x19c   :  { %1833 = vmatprep.subr.bf16.mxu1 %v1942_v10 }
 0x19f   :  { %1834 = vmatpush3.bf16.msra.mxu1 %v1942_v10 }
 0x1a0   :  { %1835 = vmatprep.subr.bf16.mxu1 %v1943_v11 }
 0x1a3   :  { %1836 = vmatpush3.bf16.msra.mxu1 %v1943_v11 }
 0x1a4   :  { %1837 = vmatprep.subr.bf16.mxu1 %v1944_v12 }
 0x1a7   :  { %1838 = vmatpush3.bf16.msra.mxu1 %v1944_v12 }
 0x1e9   :  { %v2309_v2 = vpop.f32.mrb[0].mxu1 }
 0x1ea   :  { %v1721_v4 = vpop.f32.mrb[1].mxu1 }
 0x1eb   :  { %v2314_v6 = vpop.f32.mrb[2].mxu1 }
 0x1ec   :  { %v1722_v8 = vpop.f32.mrb[3].mxu1 }
 0x20b   :  { %v1761_v25 = vpop.f32.mrb[4].mxu1 }
 0x20c   :  { %v620_v26 = vadd.f32 %v1761_v25, %v528_v21  ;;  %v611_v27 = vpop.f32.mrb[5].mxu1 }
 0x20d   :  { %v612_v29 = vadd.f32 %v611_v27, %v528_v21  ;;  %v1762_v30 = vpop.f32.mrb[6].mxu1 }
 0x20e   :  { %v623_v31 = vadd.f32 %v1762_v30, %v528_v21  ;;  %v614_v32 = vpop.f32.mrb[7].mxu1  ;;  %v1227_v40 = vmul.f32 %v1218_v38, %v620_v26 }
 0x20f   :  { %v615_v39 = vadd.f32 %v614_v32, %v528_v21  ;;  %v1225_v42 = vmul.f32 %v1208_v24, %v612_v29 }
 0x210   :  { %v1228_v41 = vmul.f32 %v1223_v35, %v623_v31 }
 0x211   :  { %v1226_v43 = vmul.f32 %v1213_v23, %v615_v39 }
 0x212   :  { %v2354_v44 = vadd.f32 %v1228_v41, %v1227_v40 }
 0x213   :  { %v2356_v45 = vadd.f32 %v1226_v43, %v1225_v42  ;;  %v1950_v42 = vld [vmem:[%s2406_s0 + $0x228] sm:$0xff]   ;;  %v1951_v43 = vld [vmem:[%s2406_s0 + $0x230] sm:$0xff]  }
 0x214   :  { %1854 = vmatpush3.bf16.msra.mxu0 %v1950_v42 }
 0x215   :  { %1855 = vmatprep.subr.bf16.mxu0 %v1994_v5 }
 0x218   :  { %1856 = vmatpush3.bf16.msra.mxu0 %v1951_v43 }
 0x219   :  { %1857 = vmatprep.subr.bf16.mxu0 %v1994_v5  ;;  %v1261_v5 = vrot.slane %v2354_v44, 4 }
 0x21c   :  { %1858 = vmatpush3.bf16.msra.mxu0 %v1952_v46 }
 0x25d   :  { %v1821_v48 = vpop.f32.mrb[8].mxu1 }
 0x25e   :  { %v1027_v49 = vadd.f32 %v1821_v48, %v935_v47  ;;  %v1018_v50 = vpop.f32.mrb[9].mxu1 }
 0x25f   :  { %v1019_v51 = vadd.f32 %v1018_v50, %v935_v47  ;;  %v1822_v52 = vpop.f32.mrb[10].mxu1 }
 0x260   :  { %v1039_v53 = vmul.f32 0.044715, %v1027_v49  ;;  %v1030_v54 = vadd.f32 %v1822_v52, %v935_v47  ;;  %v1021_v55 = vpop.f32.mrb[11].mxu1  ;;  %v1035_v26 = vmul.f32 0.5, %v1027_v49 }
 0x261   :  { %v1037_v56 = vmul.f32 0.044715, %v1019_v51  ;;  %v1022_v57 = vadd.f32 %v1021_v55, %v935_v47  ;;  %v1033_v29 = vmul.f32 0.5, %v1019_v51  ;;  %v247_v47 = vsub.s32 1, %v2240_v34 }
 0x262   :  { %v1043_v58 = vmul.f32 %v1039_v53, %v1027_v49  ;;  %v1040_v59 = vmul.f32 0.044715, %v1030_v54  ;;  %v1036_v27 = vmul.f32 0.5, %v1030_v54  ;;  %v1240_v55 = vrot.slane %v2356_v45, 4 }
 0x263   :  { %v1041_v60 = vmul.f32 %v1037_v56, %v1019_v51  ;;  %v1038_v61 = vmul.f32 0.044715, %v1022_v57  ;;  %v1034_v30 = vmul.f32 0.5, %v1022_v57  ;;  %v248_v48 = vrot.slane %v2245_v36, %v247_v47 }
 0x264   :  { %v1047_v62 = vmul.f32 %v1043_v58, %v1027_v49  ;;  %v1044_v63 = vmul.f32 %v1040_v59, %v1030_v54  ;;  %v1262_v58 = vadd.f32 %v1261_v5, %v2354_v44  ;;  %v1241_v59 = vadd.f32 %v1240_v55, %v2356_v45 }
 0x265   :  { %v1045_v0 = vmul.f32 %v1041_v60, %v1019_v51  ;;  %v1042_v1 = vmul.f32 %v1038_v61, %v1022_v57  ;;  %v335_v50 = vadd.f32 %v2314_v6, %v248_v48 }
 0x266   :  { %v1051_v3 = vadd.f32 %v1047_v62, %v1027_v49  ;;  %v1048_v4 = vmul.f32 %v1044_v63, %v1030_v54  ;;  %v332_v49 = vadd.f32 %v2309_v2, %v248_v48  ;;  %v1263_v61 = vrot.slane %v1262_v58, 2 }
 0x267   :  { %v1046_v7 = vmul.f32 %v1042_v1, %v1022_v57  ;;  %v1049_v8 = vadd.f32 %v1045_v0, %v1019_v51  ;;  %v1204_v52 = vmul.f32 %v2335_v16, %v335_v50  ;;  %v1242_v6 = vrot.slane %v1241_v59, 2 }
 0x268   :  { %v1055_v10 = vmul.f32 0.7978846, %v1051_v3  ;;  %v1052_v11 = vadd.f32 %v1048_v4, %v1030_v54  ;;  %v1203_v51 = vmul.f32 %v2337_v18, %v332_v49  ;;  %v1089_v18 = vsub.s32 6, %v2240_v34 }
 0x269   :  { %v1050_v12 = vadd.f32 %v1046_v7, %v1022_v57  ;;  %v1053_v13 = vmul.f32 0.7978846, %v1049_v8  ;;  %v1253_v54 = vrot.slane %v1204_v52, 4  ;;  %v1243_v63 = vadd.f32 %v1242_v6, %v1241_v59 }
 0x26a   :  { %1973 = vtanh.f32 %v1055_v10  ;;  %v1056_v14 = vmul.f32 0.7978846, %v1052_v11  ;;  %v1232_v53 = vrot.slane %v1203_v51, 4  ;;  %v1264_v0 = vadd.f32 %v1263_v61, %v1262_v58 }
 0x26b   :  { %v1054_v19 = vmul.f32 0.7978846, %v1050_v12  ;;  %1975 = vtanh.f32 %v1053_v13  ;;  %v1254_v57 = vadd.f32 %v1253_v54, %v1204_v52  ;;  %v1090_v1 = vrot.slane %v2245_v36, %v1089_v18 }
 0x26c   :  { %1977 = vtanh.f32 %v1056_v14  ;;  %v1233_v56 = vadd.f32 %v1232_v53, %v1203_v51  ;;  %v1244_v8 = vrot.slane %v1243_v63, 1  ;;  %v1265_v10 = vrot.slane %v1264_v0, 1 }
 0x26d   :  { %1979 = vtanh.f32 %v1054_v19  ;;  %v1255_v2 = vrot.slane %v1254_v57, 2 }
 0x26e   :  { %v1234_v60 = vrot.slane %v1233_v56, 2 }
 0x26f   :  { %v1256_v16 = vadd.f32 %v1255_v2, %v1254_v57 }
 0x270   :  { %v1235_v62 = vadd.f32 %v1234_v60, %v1233_v56 }
 0x271   :  { %v1257_v4 = vrot.slane %v1256_v16, 1 }
 0x272   :  { %v1236_v3 = vrot.slane %v1235_v62, 1 }
 0x273   :  { %v1258_v12 = vadd.f32 %v1257_v4, %v1256_v16 }
 0x274   :  { %v1974_v20 = vpop.eup %1973  ;;  %v1237_v45 = vadd.f32 %v1236_v3, %v1235_v62 }
 0x275   :  { %v1976_v21 = vpop.eup %1975  ;;  %v1063_v22 = vadd.f32 1.0, %v1974_v20  ;;  %v1245_v20 = vadd.f32 %v1244_v8, %v1243_v63 }
 0x276   :  { %v1978_v23 = vpop.eup %1977  ;;  %v1061_v24 = vadd.f32 1.0, %v1976_v21 }
 0x277   :  { %v1980_v25 = vpop.eup %1979  ;;  %v1064_v28 = vadd.f32 1.0, %v1978_v23  ;;  %v1067_v32 = vmul.f32 %v1063_v22, %v1035_v26  ;;  %v1266_v22 = vadd.f32 %v1265_v10, %v1264_v0 }
 0x278   :  { %v1062_v31 = vadd.f32 1.0, %v1980_v25  ;;  %v1065_v38 = vmul.f32 %v1061_v24, %v1033_v29 }
 0x279   :  { %v1068_v35 = vmul.f32 %v1064_v28, %v1036_v27 }
 0x27a   :  { %v1066_v39 = vmul.f32 %v1062_v31, %v1034_v30 }
 0x27b   :  { %v1070_v40 = vpack.c.bf16 %v1068_v35, %v1067_v32  ;;  %v1295_v32 = vsub.s32 7, %v2240_v34  ;;  %v2387_v35 = vand.u32 127, %v111_v33 }
 0x27c   :  { %v1069_v41 = vpack.c.bf16 %v1066_v39, %v1065_v38 }
 0x27d   :  { %v1296_v38 = vrot.slane %v2245_v36, %v1295_v32  ;;  %vm1410_vm1 = vcmp.ge.s32.totalorder %v2387_v35, 16  ;;  %vm1411_vm2 = vcmp.lt.s32.totalorder %v2387_v35, 40  ;;  %vm1388_vm4 = vcmp.lt.s32.totalorder %v2387_v35, 16 }
 0x27e   :  { %1839 = vmatprep.mubr.bf16.mxu1 %v1069_v41  ;;  %vm1412_vm3 = vmand %vm1410_vm1, %vm1411_vm2  ;;  %v1595_v41 = vld [vmem:[%s2407_s1 + $0x48] sm:$0xff]   ;;  %vm1485_vm14 = vcmp.eq.s32.totalorder %v2387_v35, 1  ;;  %vm1484_vm15 = vcmp.eq.s32.totalorder %v2387_v35, 0 }
 0x27f   :  { %1840 = vmatmul.mubr.bf16.vlgmr.msra.gmra.mrb[12].mxu1 %v1070_v40  ;;  %v1591_v54 = vunpack.c.h.bf16 %v1595_v41 }
 0x281   :  { %v1442_v56 = vmul.f32 %v1591_v54, %v1591_v54 }
 0x352   :  { %v1841_v7 = vpop.f32.mrb[12].mxu1 }
 0x353   :  { %v1173_v44 = vpop.f32.mrb[13].mxu1  ;;  %v1181_v25 = vadd.f32 %v1841_v7, %v1090_v1 }
 0x354   :  { %v1174_v11 = vadd.f32 %v1173_v44, %v1090_v1  ;;  %v1842_v13 = vpop.f32.mrb[14].mxu1 }
 0x355   :  { %v1176_v14 = vpop.f32.mrb[15].mxu1  ;;  %v1184_v27 = vadd.f32 %v1842_v13, %v1090_v1 }
 0x356   :  { %v1238_v19 = vadd.f32 %v1237_v45, %v1174_v11  ;;  %v1259_v21 = vadd.f32 %v1258_v12, %v1174_v11 }
 0x358   :  { %v1246_v23 = vadd.f32 %v1245_v20, %v1238_v19  ;;  %v1267_v24 = vadd.f32 %v1266_v22, %v1259_v21 }
 0x35a   :  { %v1250_v26 = vrot.slane %v1246_v23, %v113_v37  ;;  %v1271_v28 = vrot.slane %v1267_v24, %v247_v47  ;;  %v1590_v47 = vunpack.c.l.bf16 %v1595_v41 }
 0x35c   :  { %v1274_v29 = vadd.f32 %v1250_v26, %v1181_v25  ;;  %v1275_v30 = vadd.f32 %v1271_v28, %v1184_v27  ;;  %v1441_v52 = vmul.f32 %v1590_v47, %v1590_v47 }
 0x35e   :  { %v1276_v31 = vpack.c.bf16 %v1275_v30, %v1274_v29 }
 0x360   :  { %1860 = vmatmul.mubr.bf16.vlgmr.msra.gmra.mrb[12].mxu0 %v1276_v31 }
 0x433   :  { %v1379_v39 = vpop.f32.mrb[12].mxu0 }
 0x434   :  { %v1380_v37 = vadd.f32 %v1379_v39, %v1296_v38  ;;  %v1861_v40 = vpop.f32.mrb[13].mxu0 }
 0x435   :  { %v1382_v42 = vpop.f32.mrb[14].mxu0 }
 0x436   :  { %v1389_v33 = vsub.f32 %v1380_v37, %v1578_v17  ;;  %v1383_v34 = vadd.f32 %v1382_v42, %v1296_v38  ;;  %v1862_v36 = vpop.f32.mrb[15].mxu0  ;;  %v1413_v43 = vsel %vm1412_vm3, %v1380_v37, 0.0 }
 0x437   :  { %v1421_v46 = vmul.f32 %v1413_v43, %v1413_v43  ;;  %v1415_v17 = vmul.f32 %v1590_v47, %v1413_v43 }
 0x438   :  { %v1390_v48 = vsub.f32 %v1383_v34, %v1579_v15  ;;  %v1414_v49 = vsel %vm1412_vm3, %v1383_v34, 0.0  ;;  %v1391_v50 = vsel %vm1388_vm4, %v1389_v33, 0.0 }
 0x439   :  { %1423 = vadd.xlane.f32.xlu0 %v1421_v46  ;;  %v1422_v51 = vmul.f32 %v1414_v49, %v1414_v49  ;;  %v1393_v5 = vmul.f32 %v1391_v50, %v1391_v50  ;;  %v1416_v58 = vmul.f32 %v1591_v54, %v1414_v49 }
 0x43a   :  { %v1392_v53 = vsel %vm1388_vm4, %v1390_v48, 0.0 }
 0x43b   :  { %1425 = vadd.xlane.f32.xlu1 %v1422_v51  ;;  %v1394_v55 = vmul.f32 %v1392_v53, %v1392_v53 }
 0x43d   :  { %1443 = vadd.xlane.f32.xlu0 %v1441_v52  ;;  %v1395_v57 = vadd.f32 %v1394_v55, %v1393_v5 }
 0x43f   :  { %1417 = vadd.xlane.f32.xlu1 %v1415_v17 }
 0x441   :  { %1445 = vadd.xlane.f32.xlu0 %v1442_v56 }
 0x443   :  { %1396 = vadd.xlane.f32.xlu1 %v1395_v57 }
 0x445   :  { %1419 = vadd.xlane.f32.xlu0 %v1416_v58 }
 0x4c6   :  { %v1424_v9 = vpop.xlane.xlu0 %1423 }
 0x4c7   :  { %1981 = vrsqrt.f32 %v1424_v9  ;;  %vm1429_vm5 = vcmp.eq.f32.partialorder %v1424_v9, inf  ;;  %v1432_v8 = vand.u32 2147483648, %v1424_v9  ;;  %vm1431_vm7 = vcmp.eq.f32.partialorder %v1424_v9, 0.0 }
 0x4c8   :  { %v1426_v15 = vpop.xlane.xlu1 %1425 }
 0x4c9   :  { %1983 = vrsqrt.f32 %v1426_v15  ;;  %vm1436_vm9 = vcmp.eq.f32.partialorder %v1426_v15, inf  ;;  %v1439_v22 = vand.u32 2147483648, %v1426_v15  ;;  %vm1438_vm11 = vcmp.eq.f32.partialorder %v1426_v15, 0.0 }
 0x4ca   :  { %v1444_v59 = vpop.xlane.xlu0 %1443 }
 0x4cb   :  { %1985 = vrsqrt.f32 %v1444_v59  ;;  %vm1449_vm6 = vcmp.eq.f32.partialorder %v1444_v59, inf  ;;  %v1452_v10 = vand.u32 2147483648, %v1444_v59  ;;  %vm1451_vm8 = vcmp.eq.f32.partialorder %v1444_v59, 0.0 }
 0x4cc   :  { %v1418_v60 = vpop.xlane.xlu1 %1417 }
 0x4ce   :  { %v1446_v2 = vpop.xlane.xlu0 %1445 }
 0x4cf   :  { %1987 = vrsqrt.f32 %v1446_v2  ;;  %vm1456_vm10 = vcmp.eq.f32.partialorder %v1446_v2, inf  ;;  %v1459_v23 = vand.u32 2147483648, %v1446_v2  ;;  %vm1458_vm12 = vcmp.eq.f32.partialorder %v1446_v2, 0.0 }
 0x4d0   :  { %v1397_v61 = vpop.xlane.xlu1 %1396 }
 0x4d1   :  { %v1982_v6 = vpop.eup %1981  ;;  %v1398_v18 = vrot.slane %v1397_v61, 4 }
 0x4d2   :  { %v1428_v62 = vmul.f32 %v1982_v6, %v1424_v9  ;;  %v1420_v39 = vpop.xlane.xlu0 %1419 }
 0x4d3   :  { %v1984_v16 = vpop.eup %1983  ;;  %v1399_v63 = vadd.f32 %v1398_v18, %v1397_v61 }
 0x4d4   :  { %v1430_v3 = vsel %vm1429_vm5, %v1424_v9, %v1428_v62  ;;  %v1435_v4 = vmul.f32 %v1984_v16, %v1426_v15 }
 0x4d5   :  { %v1986_v0 = vpop.eup %1985  ;;  %v1400_v1 = vrot.slane %v1399_v63, 2  ;;  %v1433_v12 = vsel %vm1431_vm7, %v1432_v8, %v1430_v3 }
 0x4d6   :  { %v1448_v7 = vmul.f32 %v1986_v0, %v1444_v59  ;;  %v1437_v19 = vsel %vm1436_vm9, %v1426_v15, %v1435_v4 }
 0x4d7   :  { %v1401_v44 = vadd.f32 %v1400_v1, %v1399_v63  ;;  %v1440_v27 = vsel %vm1438_vm11, %v1439_v22, %v1437_v19 }
 0x4d8   :  { %v1450_v11 = vsel %vm1449_vm6, %v1444_v59, %v1448_v7 }
 0x4d9   :  { %v1988_v45 = vpop.eup %1987  ;;  %v1453_v13 = vsel %vm1451_vm8, %v1452_v10, %v1450_v11  ;;  %v1402_v14 = vrot.slane %v1401_v44, 1 }
 0x4da   :  { %v1461_v20 = vmul.f32 %v1453_v13, %v1433_v12  ;;  %v1455_v21 = vmul.f32 %v1988_v45, %v1446_v2 }
 0x4db   :  { %v1403_v24 = vadd.f32 %v1402_v14, %v1401_v44 }
 0x4dc   :  { %v1463_v25 = vmax.f32 %v1461_v20, 1e-08  ;;  %v1457_v26 = vsel %vm1456_vm10, %v1446_v2, %v1455_v21 }
 0x4dd   :  { %v1460_v28 = vsel %vm1458_vm12, %v1459_v23, %v1457_v26  ;;  %1867 = vpush %v1403_v24 }
 0x4de   :  { %1989 = vrcp.f32 %v1463_v25  ;;  %v1462_v29 = vmul.f32 %v1460_v28, %v1440_v27 }
 0x4e0   :  { %v1464_v30 = vmax.f32 %v1462_v29, 1e-08 }
 0x4e2   :  { %1991 = vrcp.f32 %v1464_v30 }
 0x4e8   :  { %v1990_v31 = vpop.eup %1989 }
 0x4e9   :  { %v1467_v32 = vmul.f32 %v1990_v31, %v1418_v60 }
 0x4eb   :  { %v1470_v40 = vsel %vm1469_vm13, %v1467_v32, 0.0 }
 0x4ec   :  { %v1992_v38 = vpop.eup %1991 }
 0x4ed   :  { %v1468_v37 = vmul.f32 %v1992_v38, %v1420_v39 }
 0x4ef   :  { %v1471_v41 = vsel %vm1469_vm13, %v1468_v37, 0.0 }
 0x4f0   :  { %v1472_v42 = vadd.f32 %v1471_v41, %v1470_v40 }
 0x4f2   :  { %1473 = vadd.xlane.f32.xlu0 %v1472_v42 }
 0x50e   :  { %s1868_s1 = spop %1867 }
 0x50f   :  { %s1405_s12 = smul.f32 0.00390625, %s1868_s1 }
 0x511   :  { %v1488_v50 = vstv %s1405_s12 }
 0x57f   :  { %v1474_v33 = vpop.xlane.xlu0 %1473 }
 0x580   :  { %v1475_v34 = vrot.slane %v1474_v33, 4 }
 0x582   :  { %v1476_v36 = vadd.f32 %v1475_v34, %v1474_v33 }
 0x584   :  { %v1477_v43 = vrot.slane %v1476_v36, 2 }
 0x586   :  { %v1478_v46 = vadd.f32 %v1477_v43, %v1476_v36 }
 0x588   :  { %v1479_v47 = vrot.slane %v1478_v46, 1 }
 0x58a   :  { %v1480_v48 = vadd.f32 %v1479_v47, %v1478_v46 }
 0x58c   :  { %1869 = vpush %v1480_v48 }
 0x5bd   :  { %s1870_s10 = spop %1869 }
 0x5be   :  { %s1482_s11 = smul.f32 0.0625, %s1870_s10 }
 0x5c0   :  { %s1483_s13 = ssub.f32 1.0, %s1482_s11 }
 0x5c2   :  { %v1486_v49 = vstv %s1483_s13 }
 0x5c3   :  { %v1487_v51 = vsel %vm1485_vm14, %v1486_v49, 0.0 }
 0x5c4   :  { %v1489_v52 = vsel %vm1484_vm15, %v1488_v50, %v1487_v51 }
 0x5c5   :  { %1490 = vst [vmem:[%s2408_s3] sm:$0x1] %v1489_v52 }

</bundles_post_ra>
